<compile_context>
chip_gen: v6e
topology: v6e:2x2x1
jax: 0.10.0
libtpu: 0.0.40
codegen_flags: <defaults>
</compile_context>

<pallas_src>
import jax
import jax.numpy as jnp
import numpy as np
from jax.experimental import pallas as pl
from jax.experimental.pallas import tpu as pltpu

# ---- dimensions (match the PyTorch module) ---------------------------------
IMG_SHAPE = (1, 28, 28)
D_IMG = int(np.prod(IMG_SHAPE))          # 784
N_CLASSES = 10
D_IN = D_IMG + N_CLASSES                 # 794
HID = 512
D_OUT = 1
D_EMB_PAD = 128                          # label-embedding features padded to one lane tile
D_OUT_PAD = 128                          # lane-dense output; slice [:, :1] after
NEG_SLOPE = 0.2
TB_MAX = 256                             # batch tile

# packed bias slab layout (all f32, lane-aligned offsets)
_B1_OFF, _B2_OFF, _B3_OFF, _B4_OFF = 0, HID, 2 * HID, 3 * HID
_BIAS_LEN = 3 * HID + D_OUT_PAD          # 1664


def _leaky_relu(x, neg_slope=NEG_SLOPE):
    return jnp.where(x >= 0, x, neg_slope * x)


def discriminator_kernel(img_ref, emb_ref, w1a_ref, w1b_ref, w2_ref, w3_ref,
                         w4_ref, bias_ref, out_ref):
    """One batch tile: (TB, 784) + (TB, 128) bf16 -> (TB, 128) f32 logits.

    The validity logit lives in column 0 (W4/b4 zero-padded to 128 cols).
    Weights are bf16; all matmul accumulation is f32.
    """
    b1 = bias_ref[:, _B1_OFF:_B1_OFF + HID]
    b2 = bias_ref[:, _B2_OFF:_B2_OFF + HID]
    b3 = bias_ref[:, _B3_OFF:_B3_OFF + HID]
    b4 = bias_ref[:, _B4_OFF:_B4_OFF + D_OUT_PAD]

    # Linear(794 -> 512) + LeakyReLU(0.2), first dot split img/emb so the
    # concatenated (B, 896) slab never hits HBM.
    h = (jnp.dot(img_ref[...], w1a_ref[...], preferred_element_type=jnp.float32)
         + jnp.dot(emb_ref[...], w1b_ref[...], preferred_element_type=jnp.float32)
         + b1)
    h = _leaky_relu(h)

    # Linear(512 -> 512) + Dropout(0.4) + LeakyReLU(0.2)
    # TODO(synk): Dropout(0.4) implemented as identity (eval/inference
    # semantics); train-mode stochastic masking would need pltpu.prng_* and
    # cannot reproduce the PyTorch RNG stream anyway.
    h = jnp.dot(h.astype(jnp.bfloat16), w2_ref[...],
                preferred_element_type=jnp.float32) + b2
    h = _leaky_relu(h)

    # Linear(512 -> 512) + Dropout(0.4) + LeakyReLU(0.2)
    h = jnp.dot(h.astype(jnp.bfloat16), w3_ref[...],
                preferred_element_type=jnp.float32) + b3
    h = _leaky_relu(h)

    # Linear(512 -> 1), output padded to 128 lanes for an unmasked store
    out_ref[...] = jnp.dot(h.astype(jnp.bfloat16), w4_ref[...],
                           preferred_element_type=jnp.float32) + b4


def init_params(key):
    """Deterministic synthetic f32 parameters (shapes match the PyTorch module)."""
    dims = [D_IN, HID, HID, HID, D_OUT]
    keys = jax.random.split(key, 9)
    ki = iter(keys)

    params = {}
    # nn.Embedding(n_classes, n_classes): N(0, 1)
    params["emb"] = jax.random.normal(next(ki), (N_CLASSES, N_CLASSES), jnp.float32)

    # Linear layers stored as (in, out) so the kernel computes x @ W + b
    for li in range(4):
        fan_in, fan_out = dims[li], dims[li + 1]
        scale = 1.0 / np.sqrt(fan_in)
        params[f"w{li + 1}"] = jax.random.uniform(
            next(ki), (fan_in, fan_out), jnp.float32, -scale, scale)
        params[f"b{li + 1}"] = jax.random.uniform(
            next(ki), (1, fan_out), jnp.float32, -scale, scale)
    return params


def pack_params(params):
    """One-time prep: split/pad W1, pad W4 & embedding, cast to bf16, pack biases."""
    w1 = params["w1"]                                              # (794, 512)
    w1a = w1[:D_IMG].astype(jnp.bfloat16)                          # (784, 512)
    w1b = jnp.pad(w1[D_IMG:],
                  ((0, D_EMB_PAD - N_CLASSES), (0, 0))).astype(jnp.bfloat16)  # (128, 512)
    w2 = params["w2"].astype(jnp.bfloat16)
    w3 = params["w3"].astype(jnp.bfloat16)
    w4 = jnp.pad(params["w4"],
                 ((0, 0), (0, D_OUT_PAD - D_OUT))).astype(jnp.bfloat16)       # (512, 128)

    # Embedding table padded along features so the per-call gather is already
    # lane-aligned (no per-call pad/concat); bf16 to match activation traffic.
    emb = jnp.pad(params["emb"],
                  ((0, 0), (0, D_EMB_PAD - N_CLASSES))).astype(jnp.bfloat16)  # (10, 128)

    b4_pad = jnp.pad(params["b4"], ((0, 0), (0, D_OUT_PAD - D_OUT)))
    bias = jnp.concatenate(
        [params["b1"], params["b2"], params["b3"], b4_pad], axis=-1)  # (1, 1664) f32
    assert bias.shape == (1, _BIAS_LEN)

    return {"emb": emb, "w1a": w1a, "w1b": w1b, "w2": w2, "w3": w3,
            "w4": w4, "bias": bias}


def discriminator_forward(img, labels, packed):
    """img: (B, 1, 28, 28) f32, labels: (B,) int32 -> validity (B, 1) f32."""
    B = img.shape[0]
    # Glue: flatten + embedding gather (tiny), cast activations to bf16.
    img_flat = img.reshape(B, D_IMG).astype(jnp.bfloat16)          # (B, 784)
    emb = jnp.take(packed["emb"], labels, axis=0)                  # (B, 128) bf16

    # Batch tiling: TB = B for small batches, else 256-row tiles (pad B up).
    if B <= TB_MAX:
        tb, b_pad = B, B
    else:
        tb = TB_MAX
        b_pad = tb * ((B + tb - 1) // tb)
    if b_pad != B:
        img_flat = jnp.pad(img_flat, ((0, b_pad - B), (0, 0)))
        emb = jnp.pad(emb, ((0, b_pad - B), (0, 0)))

    def resident(shape):  # weights/bias: same block every step -> DMA'd once
        return pl.BlockSpec(shape, lambda i: (0, 0))

    out = pl.pallas_call(
        discriminator_kernel,
        out_shape=jax.ShapeDtypeStruct((b_pad, D_OUT_PAD), jnp.float32),
        grid_spec=pltpu.PrefetchScalarGridSpec(
            num_scalar_prefetch=0,
            grid=(b_pad // tb,),
            in_specs=[
                pl.BlockSpec((tb, D_IMG), lambda i: (i, 0)),       # img tile
                pl.BlockSpec((tb, D_EMB_PAD), lambda i: (i, 0)),   # emb tile
                resident((D_IMG, HID)),                            # w1a
                resident((D_EMB_PAD, HID)),                        # w1b
                resident((HID, HID)),                              # w2
                resident((HID, HID)),                              # w3
                resident((HID, D_OUT_PAD)),                        # w4
                resident((1, _BIAS_LEN)),                          # bias slab
            ],
            out_specs=pl.BlockSpec((tb, D_OUT_PAD), lambda i: (i, 0)),
        ),
        compiler_params=pltpu.CompilerParams(
            dimension_semantics=("parallel",),
            vmem_limit_bytes=32 * 1024 * 1024,
        ),
    )(img_flat, emb, packed["w1a"], packed["w1b"], packed["w2"],
      packed["w3"], packed["w4"], packed["bias"])

    return out[:B, :D_OUT]                                         # (B, 1) f32


def discriminator_forward_ref(img, labels, params):
    """Pure-JAX f32 reference (dropout in eval mode = identity)."""
    B = img.shape[0]
    img_flat = img.reshape(B, D_IMG)
    emb = jnp.take(params["emb"], labels, axis=0)
    h = jnp.concatenate([img_flat, emb], axis=-1)
    h = _leaky_relu(h @ params["w1"] + params["b1"])
    h = _leaky_relu(h @ params["w2"] + params["b2"])
    h = _leaky_relu(h @ params["w3"] + params["b3"])
    return h @ params["w4"] + params["b4"]


if __name__ == "__main__":
    key = jax.random.PRNGKey(0)
    k_params, k_img, k_lbl, k_img2, k_lbl2 = jax.random.split(key, 5)

    params = init_params(k_params)
    packed = pack_params(params)

    # Small-shape check (B=2): single grid step, TB = B.
    B = 2
    img = jax.random.normal(k_img, (B, *IMG_SHAPE), jnp.float32)
    labels = jax.random.randint(k_lbl, (B,), 0, N_CLASSES, jnp.int32)

    out = jax.block_until_ready(discriminator_forward(img, labels, packed))
    ref = jax.block_until_ready(discriminator_forward_ref(img, labels, params))

    assert out.shape == (B, 1), out.shape
    assert out.dtype == jnp.float32, out.dtype
    # Loosened tolerance: kernel uses bf16 weights/activations on the MXU
    # (f32 accumulation) against an all-f32 reference.
    np.testing.assert_allclose(np.asarray(out), np.asarray(ref), atol=1e-2, rtol=1e-2)

    # Exercise the batch-gridded path (B > TB_MAX, non-multiple -> padded grid).
    B2 = 272
    img2 = jax.random.normal(k_img2, (B2, *IMG_SHAPE), jnp.float32)
    labels2 = jax.random.randint(k_lbl2, (B2,), 0, N_CLASSES, jnp.int32)
    out2 = jax.block_until_ready(discriminator_forward(img2, labels2, packed))
    ref2 = jax.block_until_ready(discriminator_forward_ref(img2, labels2, params))
    assert out2.shape == (B2, 1), out2.shape
    np.testing.assert_allclose(np.asarray(out2), np.asarray(ref2), atol=1e-2, rtol=1e-2)

    print("KERNEL_OK")
</pallas_src>

<mosaic_0001>
module attributes {stable_mosaic.version = 11 : i64} {
  func.func @discriminator_kernel(%arg0: i32, %arg1: memref<2x784xbf16, #tpu.memory_space<vmem>>, %arg2: memref<2x128xbf16, #tpu.memory_space<vmem>>, %arg3: memref<784x512xbf16, #tpu.memory_space<vmem>>, %arg4: memref<128x512xbf16, #tpu.memory_space<vmem>>, %arg5: memref<512x512xbf16, #tpu.memory_space<vmem>>, %arg6: memref<512x512xbf16, #tpu.memory_space<vmem>>, %arg7: memref<512x128xbf16, #tpu.memory_space<vmem>>, %arg8: memref<1x1664xf32, #tpu.memory_space<vmem>>, %arg9: memref<2x128xf32, #tpu.memory_space<vmem>>) attributes {dimension_semantics = [#tpu.dimension_semantics<parallel>], iteration_bounds = array<i64: 1>, scalar_prefetch = 0 : i64, scratch_operands = 0 : i64, tpu.core_type = #tpu.core_type<tc>, window_params = [{transform_indices = @transform_0, window_bounds = array<i64: 2, 784>}, {transform_indices = @transform_1, window_bounds = array<i64: 2, 128>}, {pipeline_mode = #tpu.pipeline_mode<synchronous>, transform_indices = @transform_2, window_bounds = array<i64: 784, 512>}, {pipeline_mode = #tpu.pipeline_mode<synchronous>, transform_indices = @transform_3, window_bounds = array<i64: 128, 512>}, {pipeline_mode = #tpu.pipeline_mode<synchronous>, transform_indices = @transform_4, window_bounds = array<i64: 512, 512>}, {pipeline_mode = #tpu.pipeline_mode<synchronous>, transform_indices = @transform_5, window_bounds = array<i64: 512, 512>}, {pipeline_mode = #tpu.pipeline_mode<synchronous>, transform_indices = @transform_6, window_bounds = array<i64: 512, 128>}, {pipeline_mode = #tpu.pipeline_mode<synchronous>, transform_indices = @transform_7, window_bounds = array<i64: 1, 1664>}, {transform_indices = @transform_8, window_bounds = array<i64: 2, 128>}]} {
    %c0 = arith.constant 0 : index
    %c0_0 = arith.constant 0 : index
    %0 = vector.load %arg8[%c0, %c0_0] : memref<1x1664xf32, #tpu.memory_space<vmem>>, vector<1x512xf32>
    %c0_1 = arith.constant 0 : index
    %c512 = arith.constant 512 : index
    %1 = vector.load %arg8[%c0_1, %c512] : memref<1x1664xf32, #tpu.memory_space<vmem>>, vector<1x512xf32>
    %c0_2 = arith.constant 0 : index
    %c1024 = arith.constant 1024 : index
    %2 = vector.load %arg8[%c0_2, %c1024] : memref<1x1664xf32, #tpu.memory_space<vmem>>, vector<1x512xf32>
    %c0_3 = arith.constant 0 : index
    %c1536 = arith.constant 1536 : index
    %3 = vector.load %arg8[%c0_3, %c1536] : memref<1x1664xf32, #tpu.memory_space<vmem>>, vector<1x128xf32>
    %c0_4 = arith.constant 0 : index
    %c0_5 = arith.constant 0 : index
    %4 = vector.load %arg1[%c0_4, %c0_5] : memref<2x784xbf16, #tpu.memory_space<vmem>>, vector<2x784xbf16>
    %c0_6 = arith.constant 0 : index
    %c0_7 = arith.constant 0 : index
    %5 = vector.load %arg3[%c0_6, %c0_7] : memref<784x512xbf16, #tpu.memory_space<vmem>>, vector<784x512xbf16>
    %cst = arith.constant dense<0.000000e+00> : vector<2x512xf32>
    %6 = tpu.matmul %4, %5, %cst {dimension_numbers = #tpu.dot_dimension_numbers<[1], [0], [0], [1], [0, 0, 1, 1], [], []>} : vector<2x784xbf16>, vector<784x512xbf16>, vector<2x512xf32> -> vector<2x512xf32>
    %c0_8 = arith.constant 0 : index
    %c0_9 = arith.constant 0 : index
    %7 = vector.load %arg2[%c0_8, %c0_9] : memref<2x128xbf16, #tpu.memory_space<vmem>>, vector<2x128xbf16>
    %c0_10 = arith.constant 0 : index
    %c0_11 = arith.constant 0 : index
    %8 = vector.load %arg4[%c0_10, %c0_11] : memref<128x512xbf16, #tpu.memory_space<vmem>>, vector<128x512xbf16>
    %cst_12 = arith.constant dense<0.000000e+00> : vector<2x512xf32>
    %9 = tpu.matmul %7, %8, %cst_12 {dimension_numbers = #tpu.dot_dimension_numbers<[1], [0], [0], [1], [0, 0, 1, 1], [], []>} : vector<2x128xbf16>, vector<128x512xbf16>, vector<2x512xf32> -> vector<2x512xf32>
    %10 = arith.addf %6, %9 : vector<2x512xf32>
    %11 = vector.broadcast %0 : vector<1x512xf32> to vector<2x512xf32>
    %12 = arith.addf %10, %11 : vector<2x512xf32>
    %cst_13 = arith.constant 0.000000e+00 : f32
    %13 = vector.broadcast %cst_13 : f32 to vector<2x512xf32>
    %14 = arith.cmpf oge, %12, %13 : vector<2x512xf32>
    %cst_14 = arith.constant 2.000000e-01 : f32
    %15 = vector.broadcast %cst_14 : f32 to vector<2x512xf32>
    %16 = arith.mulf %15, %12 : vector<2x512xf32>
    %17 = arith.select %14, %12, %16 : vector<2x512xi1>, vector<2x512xf32>
    %18 = arith.truncf %17 : vector<2x512xf32> to vector<2x512xbf16>
    %c0_15 = arith.constant 0 : index
    %c0_16 = arith.constant 0 : index
    %19 = vector.load %arg5[%c0_15, %c0_16] : memref<512x512xbf16, #tpu.memory_space<vmem>>, vector<512x512xbf16>
    %cst_17 = arith.constant dense<0.000000e+00> : vector<2x512xf32>
    %20 = tpu.matmul %18, %19, %cst_17 {dimension_numbers = #tpu.dot_dimension_numbers<[1], [0], [0], [1], [0, 0, 1, 1], [], []>} : vector<2x512xbf16>, vector<512x512xbf16>, vector<2x512xf32> -> vector<2x512xf32>
    %21 = vector.broadcast %1 : vector<1x512xf32> to vector<2x512xf32>
    %22 = arith.addf %20, %21 : vector<2x512xf32>
    %cst_18 = arith.constant 0.000000e+00 : f32
    %23 = vector.broadcast %cst_18 : f32 to vector<2x512xf32>
    %24 = arith.cmpf oge, %22, %23 : vector<2x512xf32>
    %cst_19 = arith.constant 2.000000e-01 : f32
    %25 = vector.broadcast %cst_19 : f32 to vector<2x512xf32>
    %26 = arith.mulf %25, %22 : vector<2x512xf32>
    %27 = arith.select %24, %22, %26 : vector<2x512xi1>, vector<2x512xf32>
    %28 = arith.truncf %27 : vector<2x512xf32> to vector<2x512xbf16>
    %c0_20 = arith.constant 0 : index
    %c0_21 = arith.constant 0 : index
    %29 = vector.load %arg6[%c0_20, %c0_21] : memref<512x512xbf16, #tpu.memory_space<vmem>>, vector<512x512xbf16>
    %cst_22 = arith.constant dense<0.000000e+00> : vector<2x512xf32>
    %30 = tpu.matmul %28, %29, %cst_22 {dimension_numbers = #tpu.dot_dimension_numbers<[1], [0], [0], [1], [0, 0, 1, 1], [], []>} : vector<2x512xbf16>, vector<512x512xbf16>, vector<2x512xf32> -> vector<2x512xf32>
    %31 = vector.broadcast %2 : vector<1x512xf32> to vector<2x512xf32>
    %32 = arith.addf %30, %31 : vector<2x512xf32>
    %cst_23 = arith.constant 0.000000e+00 : f32
    %33 = vector.broadcast %cst_23 : f32 to vector<2x512xf32>
    %34 = arith.cmpf oge, %32, %33 : vector<2x512xf32>
    %cst_24 = arith.constant 2.000000e-01 : f32
    %35 = vector.broadcast %cst_24 : f32 to vector<2x512xf32>
    %36 = arith.mulf %35, %32 : vector<2x512xf32>
    %37 = arith.select %34, %32, %36 : vector<2x512xi1>, vector<2x512xf32>
    %38 = arith.truncf %37 : vector<2x512xf32> to vector<2x512xbf16>
    %c0_25 = arith.constant 0 : index
    %c0_26 = arith.constant 0 : index
    %39 = vector.load %arg7[%c0_25, %c0_26] : memref<512x128xbf16, #tpu.memory_space<vmem>>, vector<512x128xbf16>
    %cst_27 = arith.constant dense<0.000000e+00> : vector<2x128xf32>
    %40 = tpu.matmul %38, %39, %cst_27 {dimension_numbers = #tpu.dot_dimension_numbers<[1], [0], [0], [1], [0, 0, 1, 1], [], []>} : vector<2x512xbf16>, vector<512x128xbf16>, vector<2x128xf32> -> vector<2x128xf32>
    %41 = vector.broadcast %3 : vector<1x128xf32> to vector<2x128xf32>
    %42 = arith.addf %40, %41 : vector<2x128xf32>
    %c0_28 = arith.constant 0 : index
    %c0_29 = arith.constant 0 : index
    %43 = vector.load %arg9[%c0_28, %c0_29] : memref<2x128xf32, #tpu.memory_space<vmem>>, vector<2x128xf32>
    tpu.vector_store %arg9[%c0_28, %c0_29], %42 {strides = array<i32>} : memref<2x128xf32, #tpu.memory_space<vmem>>, vector<2x128xf32>,
    return
  }
  func.func @transform_0(%arg0: i32) -> (i32, i32) {
    %c0_i32 = arith.constant 0 : i32
    %c0_i32_0 = arith.constant 0 : i32
    return %arg0, %c0_i32 : i32, i32
  }
  func.func @transform_1(%arg0: i32) -> (i32, i32) {
    %c0_i32 = arith.constant 0 : i32
    %c0_i32_0 = arith.constant 0 : i32
    return %arg0, %c0_i32 : i32, i32
  }
  func.func @transform_2(%arg0: i32) -> (i32, i32) {
    %c0_i32 = arith.constant 0 : i32
    %c0_i32_0 = arith.constant 0 : i32
    %c0_i32_1 = arith.constant 0 : i32
    return %c0_i32, %c0_i32_0 : i32, i32
  }
  func.func @transform_3(%arg0: i32) -> (i32, i32) {
    %c0_i32 = arith.constant 0 : i32
    %c0_i32_0 = arith.constant 0 : i32
    %c0_i32_1 = arith.constant 0 : i32
    return %c0_i32, %c0_i32_0 : i32, i32
  }
  func.func @transform_4(%arg0: i32) -> (i32, i32) {
    %c0_i32 = arith.constant 0 : i32
    %c0_i32_0 = arith.constant 0 : i32
    %c0_i32_1 = arith.constant 0 : i32
    return %c0_i32, %c0_i32_0 : i32, i32
  }
  func.func @transform_5(%arg0: i32) -> (i32, i32) {
    %c0_i32 = arith.constant 0 : i32
    %c0_i32_0 = arith.constant 0 : i32
    %c0_i32_1 = arith.constant 0 : i32
    return %c0_i32, %c0_i32_0 : i32, i32
  }
  func.func @transform_6(%arg0: i32) -> (i32, i32) {
    %c0_i32 = arith.constant 0 : i32
    %c0_i32_0 = arith.constant 0 : i32
    %c0_i32_1 = arith.constant 0 : i32
    return %c0_i32, %c0_i32_0 : i32, i32
  }
  func.func @transform_7(%arg0: i32) -> (i32, i32) {
    %c0_i32 = arith.constant 0 : i32
    %c0_i32_0 = arith.constant 0 : i32
    %c0_i32_1 = arith.constant 0 : i32
    return %c0_i32, %c0_i32_0 : i32, i32
  }
  func.func @transform_8(%arg0: i32) -> (i32, i32) {
    %c0_i32 = arith.constant 0 : i32
    %c0_i32_0 = arith.constant 0 : i32
    return %arg0, %c0_i32 : i32, i32
  }
}

</mosaic_0001>

<bundles_post_ra>
// kernel: tpu_custom_call.1
= control target key start
LH: loop header
LB: loop body
LE: loop exit
PB: predicated region body
PF: predicated region fallthrough
CT: control target
= control target key end

     0   :  { %13 = vsyncpa [#allocation3], 0  ;;  %s6041_s0 = inlined_call_operand.hbm [shape: bf16[2,784], index: 0, kind: input, shape index: {}]   ;;  %s6042_s1 = inlined_call_operand.vmem [shape: bf16[2,128], index: 1, kind: input, shape index: {}]   ;;  %s6043_s2 = inlined_call_operand.hbm [shape: bf16[784,512], index: 2, kind: input, shape index: {}]   ;;  %s6044_s3 = inlined_call_operand.hbm [shape: bf16[128,512], index: 3, kind: input, shape index: {}]   ;;  %s6045_s4 = inlined_call_operand.hbm [shape: bf16[512,512], index: 4, kind: input, shape index: {}]   ;;  %s6046_s5 = inlined_call_operand.hbm [shape: bf16[512,512], index: 5, kind: input, shape index: {}]   ;;  %s6047_s6 = inlined_call_operand.hbm [shape: bf16[512,128], index: 6, kind: input, shape index: {}]   ;;  %s6048_s7 = inlined_call_operand.hbm [shape: f32[1,1664], index: 7, kind: input, shape index: {}]   ;;  %s6049_s8 = inlined_call_operand.hbm [shape: f32[2,128], index: 8, kind: output, shape index: {}]  }
   0x1   :  { %14 = vsyncpa [#allocation6], 0 }
   0x2   :  { %15 = vsyncpa [#allocation9], 0 }
   0x3   :  { %16 = vsyncpa [#allocation12], 0 }
   0x4   :  { %17 = vsyncpa [#allocation4], 0  ;;  %s5811_s27 = smov [#allocation5]  }
   0x5   :  { %s35_s28 = sshll.u32 %s5811_s27, 4  ;;  %s36_s28 = int_to_ptr.vmem [resolvable:$true] %s35_s28 }
   0x6   :  { %s5649_s29 = scalar_lea.vmem %s36_s28, 25088  ;;  %p5654_p1 = scmp.lt.s32.totalorder %s36_s28, %s36_s28 }
   0x7   :  { %p5650_p0 = scmp.ne.s32.totalorder %s36_s28, %s5649_s29  ;;  %p5655_p2 = scmp.lt.s32.totalorder %s5649_s29, %s5649_s29 }
   0x9   :  { %p5656_p3 = por %p5655_p2, %p5654_p1 }
   0xb   :  { %p5657_p4 = pnand %p5656_p3, %p5650_p0 }
   0xd   :  { %5660 = shalt.err (!%p5657_p4)
}
   0xe   :  { %s5812_s30 = smov 256   ;;  %s5813_s9 = smov 16  }
   0xf   :  { %41 = dma.hbm_to_vmem [thread:$0]  %s6043_s2, 25088, %s36_s28, [#allocation6], %s5812_s30, %s5812_s30, %s5813_s9  }
  0x10   :  { %s5814_s12 = smov [#allocation8]   ;;  %s5815_s14 = smov [#allocation11]  }
  0x11   :  { %s59_s13 = sshll.u32 %s5814_s12, 4  ;;  %s83_s15 = sshll.u32 %s5815_s14, 4  ;;  %s60_s13 = int_to_ptr.vmem [resolvable:$true] %s59_s13  ;;  %s84_s15 = int_to_ptr.vmem [resolvable:$true] %s83_s15 }
  0x12   :  { %s5669_s16 = scalar_lea.vmem %s60_s13, 16384  ;;  %p5674_p6 = scmp.lt.s32.totalorder %s60_s13, %s60_s13 }
  0x13   :  { %p5670_p5 = scmp.ne.s32.totalorder %s60_s13, %s5669_s16  ;;  %p5675_p7 = scmp.lt.s32.totalorder %s5669_s16, %s5669_s16 }
  0x15   :  { %p5676_p8 = por %p5675_p7, %p5674_p6 }
  0x17   :  { %p5677_p9 = pnand %p5676_p8, %p5670_p5 }
  0x19   :  { %5680 = shalt.err (!%p5677_p9)
}
  0x1a   :  { %65 = dma.hbm_to_vmem [thread:$0]  %s6045_s4, 16384, %s60_s13, [#allocation9], %s5812_s30, %s5812_s30, %s5813_s9  }
  0x1b   :  { %s5689_s2 = scalar_lea.vmem %s84_s15, 4096  ;;  %p5694_p11 = scmp.lt.s32.totalorder %s84_s15, %s84_s15 }
  0x1c   :  { %p5690_p10 = scmp.ne.s32.totalorder %s84_s15, %s5689_s2  ;;  %p5695_p12 = scmp.lt.s32.totalorder %s5689_s2, %s5689_s2 }
  0x1e   :  { %p5696_p13 = por %p5695_p12, %p5694_p11 }
  0x20   :  { %p5697_p0 = pnand %p5696_p13, %p5690_p10 }
  0x22   :  { %5700 = shalt.err (!%p5697_p0)
}
  0x23   :  { %s5816_s19 = smov 64   ;;  %s5817_s20 = smov 4  }
  0x24   :  { %89 = dma.hbm_to_vmem [thread:$0]  %s6047_s6, 4096, %s84_s15, [#allocation12], %s5816_s19, %s5816_s19, %s5817_s20  }
  0x25   :  { %s5818_s23 = smov [#allocation2]   ;;  %s5819_s25 = smov [#allocation7]  }
  0x26   :  { %s24_s24 = sshll.u32 %s5818_s23, 4  ;;  %s47_s26 = sshll.u32 %s5819_s25, 4  ;;  %s25_s24 = int_to_ptr.vmem [resolvable:$true] %s24_s24  ;;  %s48_s26 = int_to_ptr.vmem [resolvable:$true] %s47_s26 }
  0x27   :  { %s5709_s4 = scalar_lea.vmem %s25_s24, 112  ;;  %s5713_s27 = scalar_lea.vmem %s25_s24, 128 }
  0x28   :  { %p5710_p1 = scmp.ne.s32.totalorder %s25_s24, %s5709_s4  ;;  %p5714_p2 = scmp.lt.s32.totalorder %s25_s24, %s25_s24 }
  0x29   :  { %p5715_p3 = scmp.lt.s32.totalorder %s5713_s27, %s5709_s4 }
  0x2b   :  { %p5716_p4 = por %p5715_p3, %p5714_p2 }
  0x2d   :  { %p5717_p5 = pnand %p5716_p4, %p5710_p1 }
  0x2f   :  { %5720 = shalt.err (!%p5717_p5)
}
  0x30   :  { %27 = dma.hbm_to_vmem [thread:$0]  %s6041_s0, 112, %s25_s24, [#allocation3]  }
  0x31   :  { %s5729_s10 = scalar_lea.vmem %s48_s26, 4096  ;;  %p5734_p7 = scmp.lt.s32.totalorder %s48_s26, %s48_s26 }
  0x32   :  { %p5730_p6 = scmp.ne.s32.totalorder %s48_s26, %s5729_s10  ;;  %p5735_p8 = scmp.lt.s32.totalorder %s5729_s10, %s5729_s10 }
  0x34   :  { %p5736_p9 = por %p5735_p8, %p5734_p7 }
  0x36   :  { %p5737_p10 = pnand %p5736_p9, %p5730_p6 }
  0x38   :  { %5740 = shalt.err (!%p5737_p10)
}
  0x39   :  { %53 = dma.hbm_to_vmem [thread:$0]  %s6044_s3, 4096, %s48_s26, [#allocation6], %s5812_s30, %s5812_s30, %s5813_s9  }
  0x3a   :  { %s5820_s12 = smov [#allocation10]   ;;  %s5821_s14 = smov [#allocation13]  }
  0x3b   :  { %s71_s13 = sshll.u32 %s5820_s12, 4  ;;  %s96_s0 = sshll.u32 %s5821_s14, 4  ;;  %s72_s13 = int_to_ptr.vmem [resolvable:$true] %s71_s13  ;;  %s97_s0 = int_to_ptr.vmem [resolvable:$true] %s96_s0 }
  0x3c   :  { %s5749_s15 = scalar_lea.vmem %s72_s13, 16384  ;;  %p5754_p12 = scmp.lt.s32.totalorder %s72_s13, %s72_s13 }
  0x3d   :  { %p5750_p11 = scmp.ne.s32.totalorder %s72_s13, %s5749_s15  ;;  %p5755_p13 = scmp.lt.s32.totalorder %s5749_s15, %s5749_s15 }
  0x3f   :  { %p5756_p0 = por %p5755_p13, %p5754_p12 }
  0x41   :  { %p5757_p1 = pnand %p5756_p0, %p5750_p11 }
  0x43   :  { %5760 = shalt.err (!%p5757_p1)
}
  0x44   :  { %77 = dma.hbm_to_vmem [thread:$0]  %s6046_s5, 16384, %s72_s13, [#allocation9], %s5812_s30, %s5812_s30, %s5813_s9  }
  0x45   :  { %s5769_s3 = scalar_lea.vmem %s97_s0, 208  ;;  %s5773_s18 = scalar_lea.vmem %s97_s0, 224 }
  0x46   :  { %p5770_p2 = scmp.ne.s32.totalorder %s97_s0, %s5769_s3  ;;  %p5774_p3 = scmp.lt.s32.totalorder %s97_s0, %s97_s0 }
  0x47   :  { %p5775_p4 = scmp.lt.s32.totalorder %s5773_s18, %s5769_s3 }
  0x49   :  { %p5776_p5 = por %p5775_p4, %p5774_p3 }
  0x4b   :  { %p5777_p6 = pnand %p5776_p5, %p5770_p2 }
  0x4d   :  { %5780 = shalt.err (!%p5777_p6)
}
  0x4e   :  { %99 = dma.hbm_to_vmem [thread:$0]  %s6048_s7, 208, %s97_s0, [#allocation12]  }
  0x4f   :  { %5801 = dma.done.wait [#allocation3], 112  }
  0x50   :  { %5802 = vsyncadd [#allocation3], 4294967184 }
  0x51   :  { %5803 = dma.done.wait [#allocation6], 29184  }
  0x52   :  { %5804 = vsyncadd [#allocation6], 4294938112 }
  0x53   :  { %5805 = dma.done.wait [#allocation9], 32768  }
  0x54   :  { %5806 = vsyncadd [#allocation9], 4294934528 }
  0x55   :  { %5807 = dma.done.wait [#allocation12], 4304  }
  0x56   :  { %5808 = vsyncadd [#allocation12], 4294962992  ;;  %v5822_v0 = vmov 0   ;;  %v4882_v1 = vld [vmem:[#allocation7 + $0xe4] ss:$16 sps:$4 sm:$0xff]   ;;  %v603_v62 = vlaneseq  ;;  %vm1633_vm0 = vcmask 130048  }
  0x57   :  { %548 = vmatprep.mubr.bf16.mxu0 %v5822_v0  ;;  %589 = vmatprep.mubr.bf16.mxu1 %v5822_v0  ;;  %v4884_v2 = vld [vmem:[#allocation7 + $0xec] ss:$16 sps:$4 sm:$0xff]   ;;  %v4886_v3 = vld [vmem:[#allocation7 + $0xe0] ss:$16 sps:$4 sm:$0xff]   ;;  %v4887_v4 = vld [vmem:[#allocation7 + $0xe8] ss:$16 sps:$4 sm:$0xff]  }
  0x58   :  { %516 = vmatprep.subr.bf16.mxu0 %v4882_v1  ;;  %557 = vmatprep.subr.bf16.mxu1 %v4884_v2  ;;  %v4888_v5 = vld [vmem:[#allocation7 + $0xc4] ss:$16 sps:$4 sm:$0xff]   ;;  %v4890_v6 = vld [vmem:[#allocation7 + $0xcc] ss:$16 sps:$4 sm:$0xff]   ;;  %v4892_v7 = vld [vmem:[#allocation7 + $0xc0] ss:$16 sps:$4 sm:$0xff]  }
  0x59   :  { %517 = vmatpush1.bf16.msra.mxu0 %v4886_v3  ;;  %558 = vmatpush1.bf16.msra.mxu1 %v4887_v4  ;;  %v4893_v8 = vld [vmem:[#allocation7 + $0xc8] ss:$16 sps:$4 sm:$0xff]   ;;  %v4894_v9 = vld [vmem:[#allocation7 + $0xa4] ss:$16 sps:$4 sm:$0xff]   ;;  %v4896_v10 = vld [vmem:[#allocation7 + $0xac] ss:$16 sps:$4 sm:$0xff]  }
  0x5a   :  { %518 = vmatprep.subr.bf16.mxu0 %v4888_v5  ;;  %559 = vmatprep.subr.bf16.mxu1 %v4890_v6  ;;  %v4898_v11 = vld [vmem:[#allocation7 + $0xa0] ss:$16 sps:$4 sm:$0xff]   ;;  %v4899_v12 = vld [vmem:[#allocation7 + $0xa8] ss:$16 sps:$4 sm:$0xff]   ;;  %v4900_v13 = vld [vmem:[#allocation7 + $0x84] ss:$16 sps:$4 sm:$0xff]  }
  0x5b   :  { %v4902_v14 = vld [vmem:[#allocation7 + $0x8c] ss:$16 sps:$4 sm:$0xff]   ;;  %v4904_v15 = vld [vmem:[#allocation7 + $0x80] ss:$16 sps:$4 sm:$0xff]   ;;  %v4905_v16 = vld [vmem:[#allocation7 + $0x88] ss:$16 sps:$4 sm:$0xff]  }
  0x5c   :  { %v4906_v17 = vld [vmem:[#allocation7 + $0x64] ss:$16 sps:$4 sm:$0xff]   ;;  %v4908_v18 = vld [vmem:[#allocation7 + $0x6c] ss:$16 sps:$4 sm:$0xff]   ;;  %v4910_v19 = vld [vmem:[#allocation7 + $0x60] ss:$16 sps:$4 sm:$0xff]  }
  0x5d   :  { %519 = vmatpush1.bf16.msra.mxu0 %v4892_v7  ;;  %560 = vmatpush1.bf16.msra.mxu1 %v4893_v8  ;;  %v4911_v20 = vld [vmem:[#allocation7 + $0x68] ss:$16 sps:$4 sm:$0xff]   ;;  %v4912_v21 = vld [vmem:[#allocation7 + $0x44] ss:$16 sps:$4 sm:$0xff]   ;;  %v4914_v22 = vld [vmem:[#allocation7 + $0x4c] ss:$16 sps:$4 sm:$0xff]  }
  0x5e   :  { %520 = vmatprep.subr.bf16.mxu0 %v4894_v9  ;;  %561 = vmatprep.subr.bf16.mxu1 %v4896_v10  ;;  %v4916_v23 = vld [vmem:[#allocation7 + $0x40] ss:$16 sps:$4 sm:$0xff]   ;;  %v4917_v24 = vld [vmem:[#allocation7 + $0x48] ss:$16 sps:$4 sm:$0xff]   ;;  %v4918_v25 = vld [vmem:[#allocation7 + $0x24] ss:$16 sps:$4 sm:$0xff]  }
  0x5f   :  { %v4920_v26 = vld [vmem:[#allocation7 + $0x2c] ss:$16 sps:$4 sm:$0xff]   ;;  %v4922_v27 = vld [vmem:[#allocation7 + $0x20] ss:$16 sps:$4 sm:$0xff]   ;;  %v4923_v28 = vld [vmem:[#allocation7 + $0x28] ss:$16 sps:$4 sm:$0xff]  }
  0x60   :  { %v4924_v29 = vld [vmem:[#allocation7 + $0x4] ss:$16 sps:$4 sm:$0xff]   ;;  %v4926_v30 = vld [vmem:[#allocation7 + $0xc] ss:$16 sps:$4 sm:$0xff]   ;;  %v4928_v31 = vld [vmem:[#allocation7] ss:$16 sps:$4 sm:$0xff]  }
  0x61   :  { %521 = vmatpush1.bf16.msra.mxu0 %v4898_v11  ;;  %562 = vmatpush1.bf16.msra.mxu1 %v4899_v12  ;;  %v4929_v32 = vld [vmem:[#allocation7 + $0x8] ss:$16 sps:$4 sm:$0xff]   ;;  %v4932_v33 = vld [vmem:[#allocation5 + $0xe4] ss:$16 sps:$4 sm:$0xff]   ;;  %v4930_v36 = vld [vmem:[#allocation5 + $0xe0] ss:$16 sps:$4 sm:$0xff]  }
  0x62   :  { %522 = vmatprep.subr.bf16.mxu0 %v4900_v13  ;;  %563 = vmatprep.subr.bf16.mxu1 %v4902_v14  ;;  %v4935_v34 = vld [vmem:[#allocation5 + $0x2e4] ss:$16 sps:$4 sm:$0xff]   ;;  %v323_v35 = vld [vmem:[%s6042_s1] sm:$0x1]  ;;  %v4933_v37 = vld [vmem:[#allocation5 + $0x2e0] ss:$16 sps:$4 sm:$0xff]  }
  0x63   :  { %v4938_v38 = vld [vmem:[#allocation5 + $0xc4] ss:$16 sps:$4 sm:$0xff]   ;;  %v4936_v40 = vld [vmem:[#allocation5 + $0xc0] ss:$16 sps:$4 sm:$0xff]   ;;  %v5823_v60 = vmov 1966171168  }
  0x64   :  { %v4941_v39 = vld [vmem:[#allocation5 + $0x2c4] ss:$16 sps:$4 sm:$0xff]   ;;  %v4939_v41 = vld [vmem:[#allocation5 + $0x2c0] ss:$16 sps:$4 sm:$0xff]   ;;  %v601_v61 = vunpack.c.l.s4 %v5823_v60  ;;  %v5908_v5 = vshrl.u32 %v603_v62, 7  ;;  %s5824_s1 = smov [#allocation14]  }
  0x65   :  { %523 = vmatpush1.bf16.msra.mxu0 %v4904_v15  ;;  %564 = vmatpush1.bf16.msra.mxu1 %v4905_v16  ;;  %v4944_v42 = vld [vmem:[#allocation5 + $0xa4] ss:$16 sps:$4 sm:$0xff]   ;;  %v4942_v44 = vld [vmem:[#allocation5 + $0xa0] ss:$16 sps:$4 sm:$0xff]   ;;  %v5913_v13 = vld [vmem:[#allocation2] sm:$0x7f] }
  0x66   :  { %524 = vmatprep.subr.bf16.mxu0 %v4906_v17  ;;  %565 = vmatprep.subr.bf16.mxu1 %v4908_v18  ;;  %v4947_v43 = vld [vmem:[#allocation5 + $0x2a4] ss:$16 sps:$4 sm:$0xff]   ;;  %v4945_v45 = vld [vmem:[#allocation5 + $0x2a0] ss:$16 sps:$4 sm:$0xff]   ;;  %v602_v4 = vunpack.c.0.s8 %v601_v61  ;;  %v5036_v62 = vld [vmem:[#allocation5 + $0xe8] ss:$16 sps:$4 sm:$0xff]  }
  0x67   :  { %v4950_v46 = vld [vmem:[#allocation5 + $0x84] ss:$16 sps:$4 sm:$0xff]   ;;  %v4948_v48 = vld [vmem:[#allocation5 + $0x80] ss:$16 sps:$4 sm:$0xff]   ;;  %s4293_s30 = sshll.u32 %s5824_s1, 4  ;;  %s4294_s30 = int_to_ptr.vmem [resolvable:$true] %s4293_s30 }
  0x68   :  { %v4953_v47 = vld [vmem:[#allocation5 + $0x284] ss:$16 sps:$4 sm:$0xff]   ;;  %v4951_v49 = vld [vmem:[#allocation5 + $0x280] ss:$16 sps:$4 sm:$0xff]   ;;  %v5911_v10 = vsub.s32 %v602_v4, %v5908_v5  ;;  %s5781_s9 = scalar_lea.vmem %s4294_s30, 32  ;;  %p5786_p8 = scmp.lt.s32.totalorder %s4294_s30, %s4294_s30 }
  0x69   :  { %525 = vmatpush1.bf16.msra.mxu0 %v4910_v19  ;;  %566 = vmatpush1.bf16.msra.mxu1 %v4911_v20  ;;  %v4956_v50 = vld [vmem:[#allocation5 + $0x64] ss:$16 sps:$4 sm:$0xff]   ;;  %v4954_v52 = vld [vmem:[#allocation5 + $0x60] ss:$16 sps:$4 sm:$0xff]   ;;  %p5782_p7 = scmp.ne.s32.totalorder %s4294_s30, %s5781_s9  ;;  %p5787_p9 = scmp.lt.s32.totalorder %s5781_s9, %s5781_s9 }
  0x6a   :  { %526 = vmatprep.subr.bf16.mxu0 %v4912_v21  ;;  %567 = vmatprep.subr.bf16.mxu1 %v4914_v22  ;;  %v4959_v51 = vld [vmem:[#allocation5 + $0x264] ss:$16 sps:$4 sm:$0xff]   ;;  %v4957_v53 = vld [vmem:[#allocation5 + $0x260] ss:$16 sps:$4 sm:$0xff]   ;;  %v606_v16 = vrot.slane %v5913_v13, %v5911_v10 }
  0x6b   :  { %v4962_v54 = vld [vmem:[#allocation5 + $0x44] ss:$16 sps:$4 sm:$0xff]   ;;  %v4960_v56 = vld [vmem:[#allocation5 + $0x40] ss:$16 sps:$4 sm:$0xff]   ;;  %p5788_p10 = por %p5787_p9, %p5786_p8 }
  0x6c   :  { %v4965_v55 = vld [vmem:[#allocation5 + $0x244] ss:$16 sps:$4 sm:$0xff]   ;;  %v4963_v57 = vld [vmem:[#allocation5 + $0x240] ss:$16 sps:$4 sm:$0xff]   ;;  %v614_v17 = vcombine.high %v606_v16, %v606_v16 }
  0x6d   :  { %527 = vmatpush1.bf16.msra.mxu0 %v4916_v23  ;;  %568 = vmatpush1.bf16.msra.mxu1 %v4917_v24  ;;  %v4968_v58 = vld [vmem:[#allocation5 + $0x24] ss:$16 sps:$4 sm:$0xff]   ;;  %v4966_v63 = vld [vmem:[#allocation5 + $0x20] ss:$16 sps:$4 sm:$0xff]   ;;  %p5789_p11 = pnand %p5788_p10, %p5782_p7 }
  0x6e   :  { %528 = vmatprep.subr.bf16.mxu0 %v4918_v25  ;;  %569 = vmatprep.subr.bf16.mxu1 %v4920_v26  ;;  %v4971_v59 = vld [vmem:[#allocation5 + $0x224] ss:$16 sps:$4 sm:$0xff]   ;;  %v4969_v1 = vld [vmem:[#allocation5 + $0x220] ss:$16 sps:$4 sm:$0xff]   ;;  %v5918_v22 = vrot.slane %v614_v17, %v5911_v10 }
  0x6f   :  { %v4974_v2 = vld [vmem:[#allocation5 + $0x4] ss:$16 sps:$4 sm:$0xff]   ;;  %v4972_v6 = vld [vmem:[#allocation5] ss:$16 sps:$4 sm:$0xff]  }
  0x70   :  { %v4977_v3 = vld [vmem:[#allocation5 + $0x204] ss:$16 sps:$4 sm:$0xff]   ;;  %v4975_v7 = vld [vmem:[#allocation5 + $0x200] ss:$16 sps:$4 sm:$0xff]   ;;  %v5923_v23 = vcombine.high %v5918_v22, %v5918_v22 }
  0x71   :  { %529 = vmatpush1.bf16.msra.mxu0 %v4922_v27  ;;  %570 = vmatpush1.bf16.msra.mxu1 %v4923_v28  ;;  %v4980_v8 = vld [vmem:[#allocation5 + $0x1e4] ss:$16 sps:$4 sm:$0xff]   ;;  %v4978_v11 = vld [vmem:[#allocation5 + $0x1e0] ss:$16 sps:$4 sm:$0xff]  }
  0x72   :  { %530 = vmatprep.subr.bf16.mxu0 %v4924_v29  ;;  %571 = vmatprep.subr.bf16.mxu1 %v4926_v30  ;;  %v4983_v9 = vld [vmem:[#allocation5 + $0x3e4] ss:$16 sps:$4 sm:$0xff]   ;;  %v4981_v12 = vld [vmem:[#allocation5 + $0x3e0] ss:$16 sps:$4 sm:$0xff]  }
  0x73   :  { %v4986_v14 = vld [vmem:[#allocation5 + $0x1c4] ss:$16 sps:$4 sm:$0xff]   ;;  %v4984_v18 = vld [vmem:[#allocation5 + $0x1c0] ss:$16 sps:$4 sm:$0xff]  }
  0x74   :  { %v4989_v15 = vld [vmem:[#allocation5 + $0x3c4] ss:$16 sps:$4 sm:$0xff]   ;;  %v4987_v19 = vld [vmem:[#allocation5 + $0x3c0] ss:$16 sps:$4 sm:$0xff]  }
  0x75   :  { %531 = vmatpush1.bf16.msra.mxu0 %v4928_v31  ;;  %572 = vmatpush1.bf16.msra.mxu1 %v4929_v32  ;;  %v4992_v20 = vld [vmem:[#allocation5 + $0x1a4] ss:$16 sps:$4 sm:$0xff]   ;;  %v4990_v24 = vld [vmem:[#allocation5 + $0x1a0] ss:$16 sps:$4 sm:$0xff]  }
  0x76   :  { %1637 = vmatprep.subr.bf16.mxu0 %v4932_v33  ;;  %1678 = vmatprep.subr.bf16.mxu1 %v4935_v34  ;;  %v4995_v21 = vld [vmem:[#allocation5 + $0x3a4] ss:$16 sps:$4 sm:$0xff]   ;;  %v4993_v25 = vld [vmem:[#allocation5 + $0x3a0] ss:$16 sps:$4 sm:$0xff]  }
  0x77   :  { %v4998_v26 = vld [vmem:[#allocation5 + $0x184] ss:$16 sps:$4 sm:$0xff]   ;;  %v4996_v28 = vld [vmem:[#allocation5 + $0x180] ss:$16 sps:$4 sm:$0xff]  }
  0x78   :  { %549 = vmatmul.mubr.bf16.vlgmr.msra.gmra.mxu0 %v323_v35  ;;  %590 = vmatmul.mubr.bf16.vlgmr.msra.gmra.mxu1 %v323_v35  ;;  %v5001_v27 = vld [vmem:[#allocation5 + $0x384] ss:$16 sps:$4 sm:$0xff]   ;;  %v4999_v29 = vld [vmem:[#allocation5 + $0x380] ss:$16 sps:$4 sm:$0xff]  }
  0x79   :  { %1638 = vmatpush1.bf16.msra.mxu0 %v4930_v36  ;;  %1679 = vmatpush1.bf16.msra.mxu1 %v4933_v37  ;;  %v5004_v30 = vld [vmem:[#allocation5 + $0x164] ss:$16 sps:$4 sm:$0xff]   ;;  %v5002_v32 = vld [vmem:[#allocation5 + $0x160] ss:$16 sps:$4 sm:$0xff]  }
  0x7a   :  { %1639 = vmatprep.subr.bf16.mxu0 %v4938_v38  ;;  %1680 = vmatprep.subr.bf16.mxu1 %v4941_v39  ;;  %v5007_v31 = vld [vmem:[#allocation5 + $0x364] ss:$16 sps:$4 sm:$0xff]   ;;  %v5005_v33 = vld [vmem:[#allocation5 + $0x360] ss:$16 sps:$4 sm:$0xff]  }
  0x7b   :  { %1669 = vmatprep.mubr.bf16.mxu0 %v5918_v22  ;;  %1710 = vmatprep.mubr.bf16.mxu1 %v5923_v23  ;;  %v5010_v34 = vld [vmem:[#allocation5 + $0x144] ss:$16 sps:$4 sm:$0xff]   ;;  %v5008_v36 = vld [vmem:[#allocation5 + $0x140] ss:$16 sps:$4 sm:$0xff]  }
  0x7c   :  { %v5013_v35 = vld [vmem:[#allocation5 + $0x344] ss:$16 sps:$4 sm:$0xff]   ;;  %v5011_v37 = vld [vmem:[#allocation5 + $0x340] ss:$16 sps:$4 sm:$0xff]  }
  0x7d   :  { %1640 = vmatpush1.bf16.msra.mxu0 %v4936_v40  ;;  %1681 = vmatpush1.bf16.msra.mxu1 %v4939_v41  ;;  %v5016_v38 = vld [vmem:[#allocation5 + $0x124] ss:$16 sps:$4 sm:$0xff]   ;;  %v5014_v40 = vld [vmem:[#allocation5 + $0x120] ss:$16 sps:$4 sm:$0xff]  }
  0x7e   :  { %1641 = vmatprep.subr.bf16.mxu0 %v4944_v42  ;;  %1682 = vmatprep.subr.bf16.mxu1 %v4947_v43  ;;  %v5019_v39 = vld [vmem:[#allocation5 + $0x324] ss:$16 sps:$4 sm:$0xff]   ;;  %v5017_v41 = vld [vmem:[#allocation5 + $0x320] ss:$16 sps:$4 sm:$0xff]   ;;  %v599_v42 = vcombine.high %v5913_v13, %v5913_v13 }
  0x7f   :  { %v5022_v43 = vld [vmem:[#allocation5 + $0x104] ss:$16 sps:$4 sm:$0xff]   ;;  %v5045_v4 = vld [vmem:[#allocation5 + $0x480] ss:$16 sps:$4 sm:$0xff]  }
  0x80   :  { %v5041_v60 = vld [vmem:[#allocation5 + $0x4a4] ss:$16 sps:$4 sm:$0xff]   ;;  %v5057_v13 = vld [vmem:[#allocation5 + $0x440] ss:$16 sps:$4 sm:$0xff]  }
  0x81   :  { %1642 = vmatpush1.bf16.msra.mxu0 %v4942_v44  ;;  %1683 = vmatpush1.bf16.msra.mxu1 %v4945_v45  ;;  %v5025_v44 = vld [vmem:[#allocation5 + $0x304] ss:$16 sps:$4 sm:$0xff]   ;;  %v5929_v45 = vrot.slane %v606_v16, %v5911_v10  ;;  %v5060_v16 = vld [vmem:[#allocation5 + $0x68] ss:$16 sps:$4 sm:$0xff]   ;;  %v5063_v17 = vld [vmem:[#allocation5 + $0x420] ss:$16 sps:$4 sm:$0xff]  }
  0x82   :  { %1643 = vmatprep.subr.bf16.mxu0 %v4950_v46  ;;  %1684 = vmatprep.subr.bf16.mxu1 %v4953_v47  ;;  %v5020_v46 = vld [vmem:[#allocation5 + $0x100] ss:$16 sps:$4 sm:$0xff]  }
  0x83   :  { %v5023_v47 = vld [vmem:[#allocation5 + $0x300] ss:$16 sps:$4 sm:$0xff]  }
  0x85   :  { %1644 = vmatpush1.bf16.msra.mxu0 %v4948_v48  ;;  %1685 = vmatpush1.bf16.msra.mxu1 %v4951_v49  ;;  %v613_v48 = vrot.slane %v599_v42, %v5911_v10  ;;  %v5029_v49 = vld [vmem:[#allocation5 + $0x4e4] ss:$16 sps:$4 sm:$0xff]   ;;  %v5099_v42 = vld [vmem:[#allocation5 + $0x560] ss:$16 sps:$4 sm:$0xff]  }
  0x86   :  { %1645 = vmatprep.subr.bf16.mxu0 %v4956_v50  ;;  %1686 = vmatprep.subr.bf16.mxu1 %v4959_v51  ;;  %v5032_v50 = vld [vmem:[#allocation5 + $0x604] ss:$16 sps:$4 sm:$0xff]  }
  0x87   :  { %v615_v51 = vcombine.high %v613_v48, %v613_v48 }
  0x89   :  { %1646 = vmatpush1.bf16.msra.mxu0 %v4954_v52  ;;  %1687 = vmatpush1.bf16.msra.mxu1 %v4957_v53  ;;  %v5934_v52 = vcombine.high %v5929_v45, %v5929_v45  ;;  %v5027_v53 = vld [vmem:[#allocation5 + $0x4e0] ss:$16 sps:$4 sm:$0xff]  }
  0x8a   :  { %1647 = vmatprep.subr.bf16.mxu0 %v4962_v54  ;;  %1688 = vmatprep.subr.bf16.mxu1 %v4965_v55  ;;  %v5030_v54 = vld [vmem:[#allocation5 + $0x600] ss:$16 sps:$4 sm:$0xff]   ;;  %v5035_v55 = vld [vmem:[#allocation5 + $0x4c4] ss:$16 sps:$4 sm:$0xff]  }
  0x8d   :  { %1648 = vmatpush1.bf16.msra.mxu0 %v4960_v56  ;;  %1689 = vmatpush1.bf16.msra.mxu1 %v4963_v57  ;;  %v5038_v56 = vld [vmem:[#allocation5 + $0xec] ss:$16 sps:$4 sm:$0xff]   ;;  %v5937_v57 = vrot.slane %v615_v51, %v5911_v10  ;;  %v5111_v51 = vld [vmem:[#allocation5 + $0x520] ss:$16 sps:$4 sm:$0xff]  }
  0x8e   :  { %1649 = vmatprep.subr.bf16.mxu0 %v4968_v58  ;;  %1690 = vmatprep.subr.bf16.mxu1 %v4971_v59  ;;  %v5940_v58 = vrot.slane %v613_v48, %v5911_v10  ;;  %v5033_v59 = vld [vmem:[#allocation5 + $0x4c0] ss:$16 sps:$4 sm:$0xff]   ;;  %v5056_v10 = vld [vmem:[#allocation5 + $0x8c] ss:$16 sps:$4 sm:$0xff]  }
  0x8f   :  { %v5110_v48 = vld [vmem:[#allocation5 + $0x16c] ss:$16 sps:$4 sm:$0xff]  }
  0x90   :  { %v5948_v61 = vcombine.high %v5940_v58, %v5940_v58 }
  0x91   :  { %1650 = vmatpush1.bf16.msra.mxu0 %v4966_v63  ;;  %1691 = vmatpush1.bf16.msra.mxu1 %v4969_v1  ;;  %v5039_v63 = vld [vmem:[#allocation5 + $0x4a0] ss:$16 sps:$4 sm:$0xff]   ;;  %v5044_v1 = vld [vmem:[#allocation5 + $0xcc] ss:$16 sps:$4 sm:$0xff]  }
  0x92   :  { %1651 = vmatprep.subr.bf16.mxu0 %v4974_v2  ;;  %1692 = vmatprep.subr.bf16.mxu1 %v4977_v3  ;;  %v5047_v2 = vld [vmem:[#allocation5 + $0x484] ss:$16 sps:$4 sm:$0xff]   ;;  %v5042_v3 = vld [vmem:[#allocation5 + $0xc8] ss:$16 sps:$4 sm:$0xff]  }
  0x95   :  { %1652 = vmatpush1.bf16.msra.mxu0 %v4972_v6  ;;  %1693 = vmatpush1.bf16.msra.mxu1 %v4975_v7  ;;  %v5050_v6 = vld [vmem:[#allocation5 + $0xac] ss:$16 sps:$4 sm:$0xff]   ;;  %v5053_v7 = vld [vmem:[#allocation5 + $0x464] ss:$16 sps:$4 sm:$0xff]  }
  0x96   :  { %1653 = vmatprep.subr.bf16.mxu0 %v4980_v8  ;;  %1694 = vmatprep.subr.bf16.mxu1 %v4983_v9  ;;  %v5048_v8 = vld [vmem:[#allocation5 + $0xa8] ss:$16 sps:$4 sm:$0xff]   ;;  %v5051_v9 = vld [vmem:[#allocation5 + $0x460] ss:$16 sps:$4 sm:$0xff]  }
  0x99   :  { %1654 = vmatpush2.bf16.msra.mxu0 %v4978_v11  ;;  %1695 = vmatpush2.bf16.msra.mxu1 %v4981_v12  ;;  %v5059_v11 = vld [vmem:[#allocation5 + $0x444] ss:$16 sps:$4 sm:$0xff]   ;;  %v5054_v12 = vld [vmem:[#allocation5 + $0x88] ss:$16 sps:$4 sm:$0xff]  }
  0x9a   :  { %1655 = vmatprep.subr.bf16.mxu0 %v4986_v14  ;;  %1696 = vmatprep.subr.bf16.mxu1 %v4989_v15  ;;  %v5062_v14 = vld [vmem:[#allocation5 + $0x6c] ss:$16 sps:$4 sm:$0xff]   ;;  %v5065_v15 = vld [vmem:[#allocation5 + $0x424] ss:$16 sps:$4 sm:$0xff]  }
  0x9d   :  { %1656 = vmatpush2.bf16.msra.mxu0 %v4984_v18  ;;  %1697 = vmatpush2.bf16.msra.mxu1 %v4987_v19  ;;  %v5068_v18 = vld [vmem:[#allocation5 + $0x4c] ss:$16 sps:$4 sm:$0xff]   ;;  %v5071_v19 = vld [vmem:[#allocation5 + $0x404] ss:$16 sps:$4 sm:$0xff]  }
  0x9e   :  { %1657 = vmatprep.subr.bf16.mxu0 %v4992_v20  ;;  %1698 = vmatprep.subr.bf16.mxu1 %v4995_v21  ;;  %v5066_v20 = vld [vmem:[#allocation5 + $0x48] ss:$16 sps:$4 sm:$0xff]   ;;  %v5069_v21 = vld [vmem:[#allocation5 + $0x400] ss:$16 sps:$4 sm:$0xff]  }
  0xa1   :  { %1658 = vmatpush2.bf16.msra.mxu0 %v4990_v24  ;;  %1699 = vmatpush2.bf16.msra.mxu1 %v4993_v25  ;;  %v5077_v24 = vld [vmem:[#allocation5 + $0x5e4] ss:$16 sps:$4 sm:$0xff]   ;;  %v5072_v25 = vld [vmem:[#allocation5 + $0x28] ss:$16 sps:$4 sm:$0xff]  }
  0xa2   :  { %1659 = vmatprep.subr.bf16.mxu0 %v4998_v26  ;;  %1700 = vmatprep.subr.bf16.mxu1 %v5001_v27  ;;  %v5075_v26 = vld [vmem:[#allocation5 + $0x5e0] ss:$16 sps:$4 sm:$0xff]   ;;  %v5080_v27 = vld [vmem:[#allocation5 + $0xc] ss:$16 sps:$4 sm:$0xff]  }
  0xa5   :  { %1660 = vmatpush2.bf16.msra.mxu0 %v4996_v28  ;;  %1701 = vmatpush2.bf16.msra.mxu1 %v4999_v29  ;;  %v5083_v28 = vld [vmem:[#allocation5 + $0x5c4] ss:$16 sps:$4 sm:$0xff]   ;;  %v5078_v29 = vld [vmem:[#allocation5 + $0x8] ss:$16 sps:$4 sm:$0xff]  }
  0xa6   :  { %1661 = vmatprep.subr.bf16.mxu0 %v5004_v30  ;;  %1702 = vmatprep.subr.bf16.mxu1 %v5007_v31  ;;  %v5081_v30 = vld [vmem:[#allocation5 + $0x5c0] ss:$16 sps:$4 sm:$0xff]   ;;  %v5086_v31 = vld [vmem:[#allocation5 + $0x1ec] ss:$16 sps:$4 sm:$0xff]  }
  0xa9   :  { %1662 = vmatpush2.bf16.msra.mxu0 %v5002_v32  ;;  %1703 = vmatpush2.bf16.msra.mxu1 %v5005_v33  ;;  %v5089_v32 = vld [vmem:[#allocation5 + $0x5a4] ss:$16 sps:$4 sm:$0xff]   ;;  %v5084_v33 = vld [vmem:[#allocation5 + $0x1e8] ss:$16 sps:$4 sm:$0xff]  }
  0xaa   :  { %1663 = vmatprep.subr.bf16.mxu0 %v5010_v34  ;;  %1704 = vmatprep.subr.bf16.mxu1 %v5013_v35  ;;  %v5087_v34 = vld [vmem:[#allocation5 + $0x5a0] ss:$16 sps:$4 sm:$0xff]   ;;  %v5092_v35 = vld [vmem:[#allocation5 + $0x1cc] ss:$16 sps:$4 sm:$0xff]  }
  0xad   :  { %1664 = vmatpush2.bf16.msra.mxu0 %v5008_v36  ;;  %1705 = vmatpush2.bf16.msra.mxu1 %v5011_v37  ;;  %v5095_v36 = vld [vmem:[#allocation5 + $0x584] ss:$16 sps:$4 sm:$0xff]   ;;  %v5090_v37 = vld [vmem:[#allocation5 + $0x1c8] ss:$16 sps:$4 sm:$0xff]  }
  0xae   :  { %1665 = vmatprep.subr.bf16.mxu0 %v5016_v38  ;;  %1706 = vmatprep.subr.bf16.mxu1 %v5019_v39  ;;  %v5093_v38 = vld [vmem:[#allocation5 + $0x580] ss:$16 sps:$4 sm:$0xff]   ;;  %v5098_v39 = vld [vmem:[#allocation5 + $0x1ac] ss:$16 sps:$4 sm:$0xff]  }
  0xb1   :  { %1666 = vmatpush2.bf16.msra.mxu0 %v5014_v40  ;;  %1707 = vmatpush2.bf16.msra.mxu1 %v5017_v41  ;;  %v5101_v40 = vld [vmem:[#allocation5 + $0x564] ss:$16 sps:$4 sm:$0xff]   ;;  %v5096_v41 = vld [vmem:[#allocation5 + $0x1a8] ss:$16 sps:$4 sm:$0xff]  }
  0xb2   :  { %1667 = vmatprep.subr.bf16.mxu0 %v5022_v43  ;;  %1708 = vmatprep.subr.bf16.mxu1 %v5025_v44  ;;  %v5104_v43 = vld [vmem:[#allocation5 + $0x18c] ss:$16 sps:$4 sm:$0xff]   ;;  %v5107_v44 = vld [vmem:[#allocation5 + $0x544] ss:$16 sps:$4 sm:$0xff]  }
  0xb5   :  { %1668 = vmatpush2.bf16.msra.mxu0 %v5020_v46  ;;  %1709 = vmatpush2.bf16.msra.mxu1 %v5023_v47  ;;  %v5102_v46 = vld [vmem:[#allocation5 + $0x188] ss:$16 sps:$4 sm:$0xff]   ;;  %v5105_v47 = vld [vmem:[#allocation5 + $0x540] ss:$16 sps:$4 sm:$0xff]  }
  0xb6   :  { %1719 = vmatprep.subr.bf16.mxu0 %v5029_v49  ;;  %1774 = vmatprep.subr.bf16.mxu1 %v5032_v50  ;;  %v5113_v49 = vld [vmem:[#allocation5 + $0x524] ss:$16 sps:$4 sm:$0xff]   ;;  %v5108_v50 = vld [vmem:[#allocation5 + $0x168] ss:$16 sps:$4 sm:$0xff]  }
  0xb8   :  { %1670 = vmatmul.mubr.bf16.vlgmr.msra.gmra.mxu0 %v5929_v45  ;;  %1711 = vmatmul.mubr.bf16.vlgmr.msra.gmra.mxu1 %v5934_v52 }
  0xb9   :  { %1720 = vmatpush1.bf16.msra.mxu0 %v5027_v53  ;;  %1775 = vmatpush1.bf16.msra.mxu1 %v5030_v54  ;;  %v5116_v53 = vld [vmem:[#allocation5 + $0x14c] ss:$16 sps:$4 sm:$0xff]   ;;  %v5119_v54 = vld [vmem:[#allocation5 + $0x504] ss:$16 sps:$4 sm:$0xff]  }
  0xba   :  { %1721 = vmatprep.subr.bf16.mxu0 %v5035_v55  ;;  %1792 = vmatprep.mubr.bf16.mxu1 %v5822_v0  ;;  %v5114_v55 = vld [vmem:[#allocation5 + $0x148] ss:$16 sps:$4 sm:$0xff]  }
  0xbb   :  { %1801 = vmatprep.subr.bf16.mxu1 %v5038_v56  ;;  %1751 = vmatprep.mubr.bf16.mxu0 %v5937_v57  ;;  %v5117_v56 = vld [vmem:[#allocation5 + $0x500] ss:$16 sps:$4 sm:$0xff]  }
  0xbd   :  { %1722 = vmatpush1.bf16.msra.mxu0 %v5033_v59  ;;  %v5122_v59 = vld [vmem:[#allocation5 + $0x12c] ss:$16 sps:$4 sm:$0xff]  }
  0xbe   :  { %1723 = vmatprep.subr.bf16.mxu0 %v5041_v60  ;;  %v5125_v60 = vld [vmem:[#allocation5 + $0x2ec] ss:$16 sps:$4 sm:$0xff]  }
  0xc0   :  { %4533 = vmatmul.mubr.msk.bf16.vlgmr.msra.gmra.mxu1 %vm1633_vm0, %v5948_v61 }
  0xc1   :  { %1802 = vmatpush1.bf16.msra.mxu1 %v5036_v62  ;;  %1724 = vmatpush1.bf16.msra.mxu0 %v5039_v63  ;;  %v5120_v62 = vld [vmem:[#allocation5 + $0x128] ss:$16 sps:$4 sm:$0xff]  }
  0xc2   :  { %1803 = vmatprep.subr.bf16.mxu1 %v5044_v1  ;;  %1725 = vmatprep.subr.bf16.mxu0 %v5047_v2  ;;  %v5123_v63 = vld [vmem:[#allocation5 + $0x2e8] ss:$16 sps:$4 sm:$0xff]   ;;  %v5128_v1 = vld [vmem:[#allocation5 + $0x10c] ss:$16 sps:$4 sm:$0xff]  }
  0xc3   :  { %1833 = vmatprep.mubr.bf16.mxu1 %v5918_v22  ;;  %v5074_v22 = vld [vmem:[#allocation5 + $0x2c] ss:$16 sps:$4 sm:$0xff]  }
  0xc4   :  { %v5131_v2 = vld [vmem:[#allocation5 + $0x2cc] ss:$16 sps:$4 sm:$0xff]  }
  0xc5   :  { %1804 = vmatpush1.bf16.msra.mxu1 %v5042_v3  ;;  %1726 = vmatpush1.bf16.msra.mxu0 %v5045_v4  ;;  %v5126_v3 = vld [vmem:[#allocation5 + $0x108] ss:$16 sps:$4 sm:$0xff]  }
  0xc6   :  { %1805 = vmatprep.subr.bf16.mxu1 %v5050_v6  ;;  %1727 = vmatprep.subr.bf16.mxu0 %v5053_v7  ;;  %v5129_v4 = vld [vmem:[#allocation5 + $0x2c8] ss:$16 sps:$4 sm:$0xff]   ;;  %v5134_v6 = vld [vmem:[#allocation5 + $0x4ec] ss:$16 sps:$4 sm:$0xff]  }
  0xc7   :  { %v5137_v7 = vld [vmem:[#allocation5 + $0x2ac] ss:$16 sps:$4 sm:$0xff]  }
  0xc9   :  { %1806 = vmatpush1.bf16.msra.mxu1 %v5048_v8  ;;  %1728 = vmatpush1.bf16.msra.mxu0 %v5051_v9  ;;  %v5132_v8 = vld [vmem:[#allocation5 + $0x4e8] ss:$16 sps:$4 sm:$0xff]  }
  0xca   :  { %1807 = vmatprep.subr.bf16.mxu1 %v5056_v10  ;;  %1729 = vmatprep.subr.bf16.mxu0 %v5059_v11  ;;  %v5135_v9 = vld [vmem:[#allocation5 + $0x2a8] ss:$16 sps:$4 sm:$0xff]   ;;  %v5140_v10 = vld [vmem:[#allocation5 + $0x4cc] ss:$16 sps:$4 sm:$0xff]  }
  0xcb   :  { %v5143_v11 = vld [vmem:[#allocation5 + $0x28c] ss:$16 sps:$4 sm:$0xff]  }
  0xcd   :  { %1808 = vmatpush1.bf16.msra.mxu1 %v5054_v12  ;;  %1730 = vmatpush1.bf16.msra.mxu0 %v5057_v13  ;;  %v5138_v12 = vld [vmem:[#allocation5 + $0x4c8] ss:$16 sps:$4 sm:$0xff]  }
  0xce   :  { %1809 = vmatprep.subr.bf16.mxu1 %v5062_v14  ;;  %1731 = vmatprep.subr.bf16.mxu0 %v5065_v15  ;;  %v5141_v13 = vld [vmem:[#allocation5 + $0x288] ss:$16 sps:$4 sm:$0xff]   ;;  %v5146_v14 = vld [vmem:[#allocation5 + $0x4ac] ss:$16 sps:$4 sm:$0xff]  }
  0xcf   :  { %v5149_v15 = vld [vmem:[#allocation5 + $0x26c] ss:$16 sps:$4 sm:$0xff]  }
  0xd1   :  { %1810 = vmatpush1.bf16.msra.mxu1 %v5060_v16  ;;  %1732 = vmatpush1.bf16.msra.mxu0 %v5063_v17  ;;  %v5144_v16 = vld [vmem:[#allocation5 + $0x4a8] ss:$16 sps:$4 sm:$0xff]   ;;  %v5152_v17 = vld [vmem:[#allocation5 + $0x48c] ss:$16 sps:$4 sm:$0xff]  }
  0xd2   :  { %1811 = vmatprep.subr.bf16.mxu1 %v5068_v18  ;;  %1733 = vmatprep.subr.bf16.mxu0 %v5071_v19  ;;  %v5155_v18 = vld [vmem:[#allocation5 + $0x24c] ss:$16 sps:$4 sm:$0xff]   ;;  %v5150_v19 = vld [vmem:[#allocation5 + $0x488] ss:$16 sps:$4 sm:$0xff]  }
  0xd5   :  { %1812 = vmatpush1.bf16.msra.mxu1 %v5066_v20  ;;  %1734 = vmatpush1.bf16.msra.mxu0 %v5069_v21  ;;  %v5158_v20 = vld [vmem:[#allocation5 + $0x46c] ss:$16 sps:$4 sm:$0xff]  }
  0xd6   :  { %1813 = vmatprep.subr.bf16.mxu1 %v5074_v22  ;;  %1735 = vmatprep.subr.bf16.mxu0 %v5077_v24  ;;  %v5161_v21 = vld [vmem:[#allocation5 + $0x22c] ss:$16 sps:$4 sm:$0xff]   ;;  %v5156_v22 = vld [vmem:[#allocation5 + $0x468] ss:$16 sps:$4 sm:$0xff]  }
  0xd7   :  { %v5159_v24 = vld [vmem:[#allocation5 + $0x228] ss:$16 sps:$4 sm:$0xff]  }
  0xd9   :  { %1814 = vmatpush1.bf16.msra.mxu1 %v5072_v25  ;;  %1736 = vmatpush2.bf16.msra.mxu0 %v5075_v26  ;;  %v5167_v25 = vld [vmem:[#allocation5 + $0x20c] ss:$16 sps:$4 sm:$0xff]   ;;  %v5162_v26 = vld [vmem:[#allocation5 + $0x448] ss:$16 sps:$4 sm:$0xff]  }
  0xda   :  { %1815 = vmatprep.subr.bf16.mxu1 %v5080_v27  ;;  %1737 = vmatprep.subr.bf16.mxu0 %v5083_v28  ;;  %v5165_v27 = vld [vmem:[#allocation5 + $0x208] ss:$16 sps:$4 sm:$0xff]   ;;  %v5170_v28 = vld [vmem:[#allocation5 + $0x42c] ss:$16 sps:$4 sm:$0xff]  }
  0xdd   :  { %1816 = vmatpush1.bf16.msra.mxu1 %v5078_v29  ;;  %1738 = vmatpush2.bf16.msra.mxu0 %v5081_v30  ;;  %v5173_v29 = vld [vmem:[#allocation5 + $0x3ec] ss:$16 sps:$4 sm:$0xff]   ;;  %v5168_v30 = vld [vmem:[#allocation5 + $0x428] ss:$16 sps:$4 sm:$0xff]  }
  0xde   :  { %1817 = vmatprep.subr.bf16.mxu1 %v5086_v31  ;;  %1739 = vmatprep.subr.bf16.mxu0 %v5089_v32  ;;  %v5171_v31 = vld [vmem:[#allocation5 + $0x3e8] ss:$16 sps:$4 sm:$0xff]   ;;  %v5176_v32 = vld [vmem:[#allocation5 + $0x40c] ss:$16 sps:$4 sm:$0xff]  }
  0xe1   :  { %1818 = vmatpush2.bf16.msra.mxu1 %v5084_v33  ;;  %1740 = vmatpush2.bf16.msra.mxu0 %v5087_v34  ;;  %v5179_v33 = vld [vmem:[#allocation5 + $0x3cc] ss:$16 sps:$4 sm:$0xff]   ;;  %v5174_v34 = vld [vmem:[#allocation5 + $0x408] ss:$16 sps:$4 sm:$0xff]  }
  0xe2   :  { %1819 = vmatprep.subr.bf16.mxu1 %v5092_v35  ;;  %1741 = vmatprep.subr.bf16.mxu0 %v5095_v36  ;;  %v5177_v35 = vld [vmem:[#allocation5 + $0x3c8] ss:$16 sps:$4 sm:$0xff]   ;;  %v5182_v36 = vld [vmem:[#allocation5 + $0x5ec] ss:$16 sps:$4 sm:$0xff]  }
  0xe5   :  { %1820 = vmatpush2.bf16.msra.mxu1 %v5090_v37  ;;  %1742 = vmatpush2.bf16.msra.mxu0 %v5093_v38  ;;  %v5185_v37 = vld [vmem:[#allocation5 + $0x3ac] ss:$16 sps:$4 sm:$0xff]   ;;  %v5180_v38 = vld [vmem:[#allocation5 + $0x5e8] ss:$16 sps:$4 sm:$0xff]  }
  0xe6   :  { %1821 = vmatprep.subr.bf16.mxu1 %v5098_v39  ;;  %1743 = vmatprep.subr.bf16.mxu0 %v5101_v40  ;;  %v5183_v39 = vld [vmem:[#allocation5 + $0x3a8] ss:$16 sps:$4 sm:$0xff]   ;;  %v5188_v40 = vld [vmem:[#allocation5 + $0x5cc] ss:$16 sps:$4 sm:$0xff]  }
  0xe9   :  { %1822 = vmatpush2.bf16.msra.mxu1 %v5096_v41  ;;  %1744 = vmatpush2.bf16.msra.mxu0 %v5099_v42  ;;  %v5191_v41 = vld [vmem:[#allocation5 + $0x38c] ss:$16 sps:$4 sm:$0xff]   ;;  %v5186_v42 = vld [vmem:[#allocation5 + $0x5c8] ss:$16 sps:$4 sm:$0xff]  }
  0xea   :  { %1823 = vmatprep.subr.bf16.mxu1 %v5104_v43  ;;  %1745 = vmatprep.subr.bf16.mxu0 %v5107_v44  ;;  %v5189_v43 = vld [vmem:[#allocation5 + $0x388] ss:$16 sps:$4 sm:$0xff]   ;;  %v5194_v44 = vld [vmem:[#allocation5 + $0x5ac] ss:$16 sps:$4 sm:$0xff]  }
  0xed   :  { %1824 = vmatpush2.bf16.msra.mxu1 %v5102_v46  ;;  %1746 = vmatpush2.bf16.msra.mxu0 %v5105_v47  ;;  %v5197_v46 = vld [vmem:[#allocation5 + $0x36c] ss:$16 sps:$4 sm:$0xff]   ;;  %v5192_v47 = vld [vmem:[#allocation5 + $0x5a8] ss:$16 sps:$4 sm:$0xff]  }
  0xee   :  { %1825 = vmatprep.subr.bf16.mxu1 %v5110_v48  ;;  %1747 = vmatprep.subr.bf16.mxu0 %v5113_v49  ;;  %v5195_v48 = vld [vmem:[#allocation5 + $0x368] ss:$16 sps:$4 sm:$0xff]   ;;  %v5200_v49 = vld [vmem:[#allocation5 + $0x58c] ss:$16 sps:$4 sm:$0xff]  }
  0xf1   :  { %1826 = vmatpush2.bf16.msra.mxu1 %v5108_v50  ;;  %1748 = vmatpush2.bf16.msra.mxu0 %v5111_v51  ;;  %v5203_v50 = vld [vmem:[#allocation5 + $0x34c] ss:$16 sps:$4 sm:$0xff]   ;;  %v5198_v51 = vld [vmem:[#allocation5 + $0x588] ss:$16 sps:$4 sm:$0xff]  }
  0xf2   :  { %1827 = vmatprep.subr.bf16.mxu1 %v5116_v53  ;;  %1749 = vmatprep.subr.bf16.mxu0 %v5119_v54  ;;  %v5201_v53 = vld [vmem:[#allocation5 + $0x348] ss:$16 sps:$4 sm:$0xff]   ;;  %v5206_v54 = vld [vmem:[#allocation5 + $0x56c] ss:$16 sps:$4 sm:$0xff]  }
  0xf5   :  { %1828 = vmatpush2.bf16.msra.mxu1 %v5114_v55  ;;  %1750 = vmatpush2.bf16.msra.mxu0 %v5117_v56  ;;  %v5209_v55 = vld [vmem:[#allocation5 + $0x32c] ss:$16 sps:$4 sm:$0xff]   ;;  %v5204_v56 = vld [vmem:[#allocation5 + $0x568] ss:$16 sps:$4 sm:$0xff]  }
  0xf6   :  { %1829 = vmatprep.subr.bf16.mxu1 %v5122_v59  ;;  %1842 = vmatprep.subr.bf16.mxu0 %v5125_v60  ;;  %v5207_v59 = vld [vmem:[#allocation5 + $0x328] ss:$16 sps:$4 sm:$0xff]   ;;  %v5212_v60 = vld [vmem:[#allocation5 + $0x54c] ss:$16 sps:$4 sm:$0xff]  }
  0xf8   :  { %1752 = vmatmul.mubr.bf16.vlgmr.msra.gmra.mxu0 %v5940_v58 }
  0xf9   :  { %1830 = vmatpush2.bf16.msra.mxu1 %v5120_v62  ;;  %1843 = vmatpush1.bf16.msra.mxu0 %v5123_v63  ;;  %v5215_v62 = vld [vmem:[#allocation5 + $0x30c] ss:$16 sps:$4 sm:$0xff]   ;;  %v5210_v63 = vld [vmem:[#allocation5 + $0x548] ss:$16 sps:$4 sm:$0xff]  }
  0xfa   :  { %1831 = vmatprep.subr.bf16.mxu1 %v5128_v1  ;;  %1844 = vmatprep.subr.bf16.mxu0 %v5131_v2  ;;  %v5213_v1 = vld [vmem:[#allocation5 + $0x308] ss:$16 sps:$4 sm:$0xff]   ;;  %v5218_v2 = vld [vmem:[#allocation5 + $0x52c] ss:$16 sps:$4 sm:$0xff]  }
  0xfb   :  { %1874 = vmatprep.mubr.bf16.mxu0 %v5923_v23  ;;  %v5147_v23 = vld [vmem:[#allocation5 + $0x268] ss:$16 sps:$4 sm:$0xff]  }
  0xfd   :  { %1832 = vmatpush2.bf16.msra.mxu1 %v5126_v3  ;;  %1845 = vmatpush1.bf16.msra.mxu0 %v5129_v4  ;;  %v5221_v3 = vld [vmem:[#allocation5 + $0x60c] ss:$16 sps:$4 sm:$0xff]   ;;  %v5216_v4 = vld [vmem:[#allocation5 + $0x528] ss:$16 sps:$4 sm:$0xff]  }
  0xfe   :  { %1883 = vmatprep.subr.bf16.mxu1 %v5134_v6  ;;  %1846 = vmatprep.subr.bf16.mxu0 %v5137_v7  ;;  %v5219_v6 = vld [vmem:[#allocation5 + $0x608] ss:$16 sps:$4 sm:$0xff]   ;;  %v5224_v7 = vld [vmem:[#allocation5 + $0x50c] ss:$16 sps:$4 sm:$0xff]  }
 0x100   :  { %1834 = vmatmul.mubr.bf16.vlgmr.msra.gmra.mxu1 %v5929_v45  ;;  %v5153_v45 = vld [vmem:[#allocation5 + $0x248] ss:$16 sps:$4 sm:$0xff]  }
 0x101   :  { %1884 = vmatpush1.bf16.msra.mxu1 %v5132_v8  ;;  %1847 = vmatpush1.bf16.msra.mxu0 %v5135_v9  ;;  %v5227_v8 = vld [vmem:[#allocation8 + $0xe4] ss:$16 sps:$4 sm:$0xff]  }
 0x102   :  { %1885 = vmatprep.subr.bf16.mxu1 %v5140_v10  ;;  %1848 = vmatprep.subr.bf16.mxu0 %v5143_v11  ;;  %v5222_v11 = vld [vmem:[#allocation5 + $0x508] ss:$16 sps:$4 sm:$0xff]  }
 0x103   :  { %1915 = vmatprep.mubr.bf16.mxu1 %v5937_v57  ;;  %v5164_v57 = vld [vmem:[#allocation5 + $0x44c] ss:$16 sps:$4 sm:$0xff]  }
 0x105   :  { %1886 = vmatpush1.bf16.msra.mxu1 %v5138_v12  ;;  %1849 = vmatpush1.bf16.msra.mxu0 %v5141_v13 }
 0x106   :  { %1887 = vmatprep.subr.bf16.mxu1 %v5146_v14  ;;  %1850 = vmatprep.subr.bf16.mxu0 %v5149_v15 }
 0x109   :  { %1888 = vmatpush1.bf16.msra.mxu1 %v5144_v16  ;;  %1851 = vmatpush1.bf16.msra.mxu0 %v5147_v23  ;;  %v5225_v16 = vld [vmem:[#allocation8 + $0xe0] ss:$16 sps:$4 sm:$0xff]  }
 0x10a   :  { %1889 = vmatprep.subr.bf16.mxu1 %v5152_v17  ;;  %1852 = vmatprep.subr.bf16.mxu0 %v5155_v18  ;;  %v5230_v18 = vld [vmem:[#allocation8 + $0xc4] ss:$16 sps:$4 sm:$0xff]  }
 0x10d   :  { %1890 = vmatpush1.bf16.msra.mxu1 %v5150_v19  ;;  %1853 = vmatpush1.bf16.msra.mxu0 %v5153_v45  ;;  %v5233_v19 = vld [vmem:[#allocation8 + $0xa4] ss:$16 sps:$4 sm:$0xff]   ;;  %v5231_v45 = vld [vmem:[#allocation8 + $0xa0] ss:$16 sps:$4 sm:$0xff]  }
 0x10e   :  { %1891 = vmatprep.subr.bf16.mxu1 %v5158_v20  ;;  %1854 = vmatprep.subr.bf16.mxu0 %v5161_v21  ;;  %v5234_v20 = vld [vmem:[#allocation8 + $0x80] ss:$16 sps:$4 sm:$0xff]   ;;  %v5239_v21 = vld [vmem:[#allocation8 + $0x64] ss:$16 sps:$4 sm:$0xff]  }
 0x111   :  { %1892 = vmatpush1.bf16.msra.mxu1 %v5156_v22  ;;  %1855 = vmatpush1.bf16.msra.mxu0 %v5159_v24  ;;  %v5237_v22 = vld [vmem:[#allocation8 + $0x60] ss:$16 sps:$4 sm:$0xff]  }
 0x112   :  { %1893 = vmatprep.subr.bf16.mxu1 %v5164_v57  ;;  %1856 = vmatprep.subr.bf16.mxu0 %v5167_v25  ;;  %v5279_v24 = vld [vmem:[#allocation8 + $0x2e0] ss:$16 sps:$4 sm:$0xff]   ;;  %v5281_v57 = vld [vmem:[#allocation8 + $0x2e4] ss:$16 sps:$4 sm:$0xff]  }
 0x113   :  { %v5285_v25 = vld [vmem:[#allocation8 + $0x2c0] ss:$16 sps:$4 sm:$0xff]  }
 0x115   :  { %1894 = vmatpush1.bf16.msra.mxu1 %v5162_v26  ;;  %1857 = vmatpush1.bf16.msra.mxu0 %v5165_v27  ;;  %v5287_v26 = vld [vmem:[#allocation8 + $0x2c4] ss:$16 sps:$4 sm:$0xff]  }
 0x116   :  { %1895 = vmatprep.subr.bf16.mxu1 %v5170_v28  ;;  %1858 = vmatprep.subr.bf16.mxu0 %v5173_v29  ;;  %v5245_v27 = vld [vmem:[#allocation8 + $0x24] ss:$16 sps:$4 sm:$0xff]   ;;  %v5243_v28 = vld [vmem:[#allocation8 + $0x20] ss:$16 sps:$4 sm:$0xff]  }
 0x117   :  { %v5291_v29 = vld [vmem:[#allocation8 + $0x2a0] ss:$16 sps:$4 sm:$0xff]  }
 0x119   :  { %1896 = vmatpush1.bf16.msra.mxu1 %v5168_v30  ;;  %1859 = vmatpush2.bf16.msra.mxu0 %v5171_v31  ;;  %v5293_v30 = vld [vmem:[#allocation8 + $0x2a4] ss:$16 sps:$4 sm:$0xff]  }
 0x11a   :  { %1897 = vmatprep.subr.bf16.mxu1 %v5176_v32  ;;  %1860 = vmatprep.subr.bf16.mxu0 %v5179_v33  ;;  %v5248_v31 = vld [vmem:[#allocation8 + $0x4] ss:$16 sps:$4 sm:$0xff]   ;;  %v5246_v32 = vld [vmem:[#allocation8] ss:$16 sps:$4 sm:$0xff]  }
 0x11b   :  { %v5297_v33 = vld [vmem:[#allocation8 + $0x280] ss:$16 sps:$4 sm:$0xff]  }
 0x11d   :  { %1898 = vmatpush1.bf16.msra.mxu1 %v5174_v34  ;;  %1861 = vmatpush2.bf16.msra.mxu0 %v5177_v35  ;;  %v5299_v34 = vld [vmem:[#allocation8 + $0x284] ss:$16 sps:$4 sm:$0xff]  }
 0x11e   :  { %1899 = vmatprep.subr.bf16.mxu1 %v5182_v36  ;;  %1862 = vmatprep.subr.bf16.mxu0 %v5185_v37  ;;  %v5251_v35 = vld [vmem:[#allocation8 + $0x1e4] ss:$16 sps:$4 sm:$0xff]   ;;  %v5249_v36 = vld [vmem:[#allocation8 + $0x1e0] ss:$16 sps:$4 sm:$0xff]  }
 0x11f   :  { %v5303_v37 = vld [vmem:[#allocation8 + $0x260] ss:$16 sps:$4 sm:$0xff]  }
 0x121   :  { %1900 = vmatpush2.bf16.msra.mxu1 %v5180_v38  ;;  %1863 = vmatpush2.bf16.msra.mxu0 %v5183_v39  ;;  %v5305_v38 = vld [vmem:[#allocation8 + $0x264] ss:$16 sps:$4 sm:$0xff]  }
 0x122   :  { %1901 = vmatprep.subr.bf16.mxu1 %v5188_v40  ;;  %1864 = vmatprep.subr.bf16.mxu0 %v5191_v41  ;;  %v5254_v39 = vld [vmem:[#allocation8 + $0x1c4] ss:$16 sps:$4 sm:$0xff]   ;;  %v5252_v40 = vld [vmem:[#allocation8 + $0x1c0] ss:$16 sps:$4 sm:$0xff]  }
 0x123   :  { %v5309_v41 = vld [vmem:[#allocation8 + $0x240] ss:$16 sps:$4 sm:$0xff]  }
 0x125   :  { %1902 = vmatpush2.bf16.msra.mxu1 %v5186_v42  ;;  %1865 = vmatpush2.bf16.msra.mxu0 %v5189_v43  ;;  %v5311_v42 = vld [vmem:[#allocation8 + $0x244] ss:$16 sps:$4 sm:$0xff]  }
 0x126   :  { %1903 = vmatprep.subr.bf16.mxu1 %v5194_v44  ;;  %1866 = vmatprep.subr.bf16.mxu0 %v5197_v46  ;;  %v5257_v43 = vld [vmem:[#allocation8 + $0x1a4] ss:$16 sps:$4 sm:$0xff]   ;;  %v5255_v44 = vld [vmem:[#allocation8 + $0x1a0] ss:$16 sps:$4 sm:$0xff]  }
 0x127   :  { %v5315_v46 = vld [vmem:[#allocation8 + $0x220] ss:$16 sps:$4 sm:$0xff]  }
 0x129   :  { %1904 = vmatpush2.bf16.msra.mxu1 %v5192_v47  ;;  %1867 = vmatpush2.bf16.msra.mxu0 %v5195_v48  ;;  %v5317_v47 = vld [vmem:[#allocation8 + $0x224] ss:$16 sps:$4 sm:$0xff]  }
 0x12a   :  { %1905 = vmatprep.subr.bf16.mxu1 %v5200_v49  ;;  %1868 = vmatprep.subr.bf16.mxu0 %v5203_v50  ;;  %v5260_v48 = vld [vmem:[#allocation8 + $0x184] ss:$16 sps:$4 sm:$0xff]   ;;  %v5258_v49 = vld [vmem:[#allocation8 + $0x180] ss:$16 sps:$4 sm:$0xff]  }
 0x12b   :  { %v5321_v50 = vld [vmem:[#allocation8 + $0x200] ss:$16 sps:$4 sm:$0xff]  }
 0x12d   :  { %1906 = vmatpush2.bf16.msra.mxu1 %v5198_v51  ;;  %1869 = vmatpush2.bf16.msra.mxu0 %v5201_v53  ;;  %v5323_v51 = vld [vmem:[#allocation8 + $0x204] ss:$16 sps:$4 sm:$0xff]  }
 0x12e   :  { %1907 = vmatprep.subr.bf16.mxu1 %v5206_v54  ;;  %1870 = vmatprep.subr.bf16.mxu0 %v5209_v55  ;;  %v5263_v53 = vld [vmem:[#allocation8 + $0x164] ss:$16 sps:$4 sm:$0xff]   ;;  %v5261_v54 = vld [vmem:[#allocation8 + $0x160] ss:$16 sps:$4 sm:$0xff]  }
 0x12f   :  { %v5327_v55 = vld [vmem:[#allocation8 + $0x3e0] ss:$16 sps:$4 sm:$0xff]  }
 0x131   :  { %1908 = vmatpush2.bf16.msra.mxu1 %v5204_v56  ;;  %1871 = vmatpush2.bf16.msra.mxu0 %v5207_v59  ;;  %v5329_v56 = vld [vmem:[#allocation8 + $0x3e4] ss:$16 sps:$4 sm:$0xff]  }
 0x132   :  { %1909 = vmatprep.subr.bf16.mxu1 %v5212_v60  ;;  %1872 = vmatprep.subr.bf16.mxu0 %v5215_v62  ;;  %v5266_v59 = vld [vmem:[#allocation8 + $0x144] ss:$16 sps:$4 sm:$0xff]   ;;  %v5333_v60 = vld [vmem:[#allocation8 + $0x3c0] ss:$16 sps:$4 sm:$0xff]  }
 0x133   :  { %v5335_v62 = vld [vmem:[#allocation8 + $0x3c4] ss:$16 sps:$4 sm:$0xff]  }
 0x135   :  { %1910 = vmatpush2.bf16.msra.mxu1 %v5210_v63  ;;  %1873 = vmatpush2.bf16.msra.mxu0 %v5213_v1  ;;  %v5264_v63 = vld [vmem:[#allocation8 + $0x140] ss:$16 sps:$4 sm:$0xff]   ;;  %v5269_v1 = vld [vmem:[#allocation8 + $0x124] ss:$16 sps:$4 sm:$0xff]  }
 0x136   :  { %1911 = vmatprep.subr.bf16.mxu1 %v5218_v2  ;;  %1938 = vmatprep.subr.bf16.mxu0 %v5221_v3  ;;  %v5339_v2 = vld [vmem:[#allocation8 + $0x3a0] ss:$16 sps:$4 sm:$0xff]   ;;  %v5341_v3 = vld [vmem:[#allocation8 + $0x3a4] ss:$16 sps:$4 sm:$0xff]  }
 0x138   :  { %v5957_v9 = vpop.f32.mrf.mxu0  ;;  %v5959_v10 = vpop.f32.mrf.mxu1  ;;  %1875 = vmatmul.mubr.bf16.vlgmr.msra.gmra.mxu0 %v5934_v52  ;;  %v5228_v52 = vld [vmem:[#allocation8 + $0xc0] ss:$16 sps:$4 sm:$0xff]  }
 0x139   :  { %1912 = vmatpush2.bf16.msra.mxu1 %v5216_v4  ;;  %1939 = vmatpush1.bf16.msra.mxu0 %v5219_v6  ;;  %v5267_v4 = vld [vmem:[#allocation8 + $0x120] ss:$16 sps:$4 sm:$0xff]   ;;  %v5272_v6 = vld [vmem:[#allocation8 + $0x104] ss:$16 sps:$4 sm:$0xff]  }
 0x13a   :  { %v5962_v12 = vpop.f32.mrf.mxu0  ;;  %v5964_v13 = vpop.f32.mrf.mxu1  ;;  %1913 = vmatprep.subr.bf16.mxu1 %v5224_v7  ;;  %1956 = vmatprep.mubr.bf16.mxu0 %v5822_v0  ;;  %v5236_v0 = vld [vmem:[#allocation8 + $0x84] ss:$16 sps:$4 sm:$0xff]  }
 0x13b   :  { %2795 = vmatprep.subr.bf16.mxu0 %v5227_v8 }
 0x13c   :  { %v554_v14 = vpop.f32.mrf.mxu0  ;;  %v595_v15 = vpop.f32.mrf.mxu1 }
 0x13d   :  { %1914 = vmatpush2.bf16.msra.mxu1 %v5222_v11  ;;  %v5347_v11 = vld [vmem:[#allocation8 + $0x384] ss:$16 sps:$4 sm:$0xff]   ;;  %v5270_v15 = vld [vmem:[#allocation8 + $0x100] ss:$16 sps:$4 sm:$0xff]  }
 0x13e   :  { %v555_v23 = vpop.f32.mrf.mxu0  ;;  %v596_v17 = vpop.f32.mrf.mxu1  ;;  %2836 = vmatprep.subr.bf16.mxu1 %v5281_v57  ;;  %v5357_v57 = vld [vmem:[#allocation8 + $0x340] ss:$16 sps:$4 sm:$0xff]  }
 0x140   :  { %1916 = vmatmul.mubr.bf16.vlgmr.msra.gmra.mxu1 %v5940_v58  ;;  %4534 = vmatmul.mubr.msk.bf16.vlgmr.msra.gmra.mxu0 %vm1633_vm0, %v5948_v61  ;;  %v5242_v58 = vld [vmem:[#allocation8 + $0x44] ss:$16 sps:$4 sm:$0xff]   ;;  %v5240_v61 = vld [vmem:[#allocation8 + $0x40] ss:$16 sps:$4 sm:$0xff]  }
 0x141   :  { %2796 = vmatpush1.bf16.msra.mxu0 %v5225_v16  ;;  %2837 = vmatpush1.bf16.msra.mxu1 %v5279_v24  ;;  %v5345_v16 = vld [vmem:[#allocation8 + $0x380] ss:$16 sps:$4 sm:$0xff]   ;;  %v5359_v24 = vld [vmem:[#allocation8 + $0x344] ss:$16 sps:$4 sm:$0xff]  }
 0x142   :  { %2797 = vmatprep.subr.bf16.mxu0 %v5230_v18  ;;  %2838 = vmatprep.subr.bf16.mxu1 %v5287_v26  ;;  %v5275_v18 = vld [vmem:[#allocation8 + $0xec] ss:$16 sps:$4 sm:$0xff]   ;;  %v5363_v26 = vld [vmem:[#allocation8 + $0x320] ss:$16 sps:$4 sm:$0xff]  }
 0x145   :  { %2798 = vmatpush1.bf16.msra.mxu0 %v5228_v52  ;;  %2839 = vmatpush1.bf16.msra.mxu1 %v5285_v25  ;;  %v5365_v25 = vld [vmem:[#allocation8 + $0x324] ss:$16 sps:$4 sm:$0xff]  }
 0x146   :  { %2799 = vmatprep.subr.bf16.mxu0 %v5233_v19  ;;  %2840 = vmatprep.subr.bf16.mxu1 %v5293_v30  ;;  %v5371_v30 = vld [vmem:[#allocation8 + $0x2ec] ss:$16 sps:$4 sm:$0xff]  }
 0x149   :  { %2800 = vmatpush1.bf16.msra.mxu0 %v5231_v45  ;;  %2841 = vmatpush1.bf16.msra.mxu1 %v5291_v29  ;;  %v5366_v29 = vld [vmem:[#allocation8 + $0x300] ss:$16 sps:$4 sm:$0xff]  }
 0x14a   :  { %2801 = vmatprep.subr.bf16.mxu0 %v5236_v0  ;;  %2842 = vmatprep.subr.bf16.mxu1 %v5299_v34  ;;  %v5351_v0 = vld [vmem:[#allocation8 + $0x360] ss:$16 sps:$4 sm:$0xff]   ;;  %v5978_v34 = vsub.s32 1, %v5908_v5 }
 0x14d   :  { %2802 = vmatpush1.bf16.msra.mxu0 %v5234_v20  ;;  %2843 = vmatpush1.bf16.msra.mxu1 %v5297_v33  ;;  %v5353_v20 = vld [vmem:[#allocation8 + $0x364] ss:$16 sps:$4 sm:$0xff]   ;;  %v5975_v33 = vld [vmem:[#allocation13] sm:$0xf] }
 0x14e   :  { %2803 = vmatprep.subr.bf16.mxu0 %v5239_v21  ;;  %2844 = vmatprep.subr.bf16.mxu1 %v5305_v38 }
 0x151   :  { %2804 = vmatpush1.bf16.msra.mxu0 %v5237_v22  ;;  %2845 = vmatpush1.bf16.msra.mxu1 %v5303_v37 }
 0x152   :  { %2805 = vmatprep.subr.bf16.mxu0 %v5242_v58  ;;  %2846 = vmatprep.subr.bf16.mxu1 %v5311_v42 }
 0x155   :  { %2806 = vmatpush1.bf16.msra.mxu0 %v5240_v61  ;;  %2847 = vmatpush1.bf16.msra.mxu1 %v5309_v41 }
 0x156   :  { %2807 = vmatprep.subr.bf16.mxu0 %v5245_v27  ;;  %2848 = vmatprep.subr.bf16.mxu1 %v5317_v47 }
 0x159   :  { %2808 = vmatpush1.bf16.msra.mxu0 %v5243_v28  ;;  %2849 = vmatpush1.bf16.msra.mxu1 %v5315_v46  ;;  %v5368_v28 = vld [vmem:[#allocation8 + $0x304] ss:$16 sps:$4 sm:$0xff]  }
 0x15a   :  { %2809 = vmatprep.subr.bf16.mxu0 %v5248_v31  ;;  %2850 = vmatprep.subr.bf16.mxu1 %v5323_v51 }
 0x15d   :  { %2810 = vmatpush1.bf16.msra.mxu0 %v5246_v32  ;;  %2851 = vmatpush1.bf16.msra.mxu1 %v5321_v50  ;;  %v5973_v32 = vsub.s32 0, %v5908_v5 }
 0x15e   :  { %2811 = vmatprep.subr.bf16.mxu0 %v5251_v35  ;;  %2852 = vmatprep.subr.bf16.mxu1 %v5329_v56 }
 0x15f   :  { %v1969_v38 = vrot.slane %v5975_v33, %v5973_v32 }
 0x161   :  { %2812 = vmatpush2.bf16.msra.mxu0 %v5249_v36  ;;  %2853 = vmatpush2.bf16.msra.mxu1 %v5327_v55 }
 0x162   :  { %2813 = vmatprep.subr.bf16.mxu0 %v5254_v39  ;;  %2854 = vmatprep.subr.bf16.mxu1 %v5335_v62  ;;  %v5278_v62 = vld [vmem:[#allocation8 + $0xcc] ss:$16 sps:$4 sm:$0xff]  }
 0x165   :  { %2814 = vmatpush2.bf16.msra.mxu0 %v5252_v40  ;;  %2855 = vmatpush2.bf16.msra.mxu1 %v5333_v60 }
 0x166   :  { %2815 = vmatprep.subr.bf16.mxu0 %v5257_v43  ;;  %2856 = vmatprep.subr.bf16.mxu1 %v5341_v3  ;;  %v5282_v3 = vld [vmem:[#allocation8 + $0xa8] ss:$16 sps:$4 sm:$0xff]  }
 0x169   :  { %2816 = vmatpush2.bf16.msra.mxu0 %v5255_v44  ;;  %2857 = vmatpush2.bf16.msra.mxu1 %v5339_v2  ;;  %v5284_v2 = vld [vmem:[#allocation8 + $0xac] ss:$16 sps:$4 sm:$0xff]  }
 0x16a   :  { %2817 = vmatprep.subr.bf16.mxu0 %v5260_v48  ;;  %2858 = vmatprep.subr.bf16.mxu1 %v5347_v11  ;;  %v5302_v11 = vld [vmem:[#allocation8 + $0x4c] ss:$16 sps:$4 sm:$0xff]  }
 0x16d   :  { %2818 = vmatpush2.bf16.msra.mxu0 %v5258_v49  ;;  %2859 = vmatpush2.bf16.msra.mxu1 %v5345_v16  ;;  %v5306_v16 = vld [vmem:[#allocation8 + $0x28] ss:$16 sps:$4 sm:$0xff]  }
 0x16e   :  { %2819 = vmatprep.subr.bf16.mxu0 %v5263_v53  ;;  %2860 = vmatprep.subr.bf16.mxu1 %v5353_v20  ;;  %v5330_v20 = vld [vmem:[#allocation8 + $0x1a8] ss:$16 sps:$4 sm:$0xff]  }
 0x171   :  { %2820 = vmatpush2.bf16.msra.mxu0 %v5261_v54  ;;  %2861 = vmatpush2.bf16.msra.mxu1 %v5351_v0  ;;  %v5332_v0 = vld [vmem:[#allocation8 + $0x1ac] ss:$16 sps:$4 sm:$0xff]  }
 0x172   :  { %2821 = vmatprep.subr.bf16.mxu0 %v5266_v59  ;;  %2862 = vmatprep.subr.bf16.mxu1 %v5359_v24  ;;  %v5273_v59 = vld [vmem:[#allocation8 + $0xe8] ss:$16 sps:$4 sm:$0xff]  }
 0x173   :  { %v5342_v24 = vld [vmem:[#allocation8 + $0x168] ss:$16 sps:$4 sm:$0xff]  }
 0x175   :  { %2822 = vmatpush2.bf16.msra.mxu0 %v5264_v63  ;;  %2863 = vmatpush2.bf16.msra.mxu1 %v5357_v57  ;;  %v5350_v57 = vld [vmem:[#allocation8 + $0x14c] ss:$16 sps:$4 sm:$0xff]  }
 0x176   :  { %2823 = vmatprep.subr.bf16.mxu0 %v5269_v1  ;;  %2864 = vmatprep.subr.bf16.mxu1 %v5365_v25  ;;  %v5276_v1 = vld [vmem:[#allocation8 + $0xc8] ss:$16 sps:$4 sm:$0xff]   ;;  %v5356_v25 = vld [vmem:[#allocation8 + $0x12c] ss:$16 sps:$4 sm:$0xff]  }
 0x178   :  { %v1671_v7 = vpop.f32.mrf.mxu0  ;;  %v1712_v8 = vpop.f32.mrf.mxu1 }
 0x179   :  { %v1672_v14 = vadd.f32 %v1671_v7, %v5957_v9  ;;  %2824 = vmatpush2.bf16.msra.mxu0 %v5267_v4  ;;  %2865 = vmatpush2.bf16.msra.mxu1 %v5363_v26  ;;  %v5290_v4 = vld [vmem:[#allocation8 + $0x8c] ss:$16 sps:$4 sm:$0xff]  }
 0x17a   :  { %v1673_v23 = vpop.f32.mrf.mxu0  ;;  %v1714_v17 = vpop.f32.mrf.mxu1  ;;  %2825 = vmatprep.subr.bf16.mxu0 %v5272_v6  ;;  %2866 = vmatprep.subr.bf16.mxu1 %v5368_v28  ;;  %v5288_v6 = vld [vmem:[#allocation8 + $0x88] ss:$16 sps:$4 sm:$0xff]   ;;  %v5296_v7 = vld [vmem:[#allocation8 + $0x6c] ss:$16 sps:$4 sm:$0xff]  }
 0x17b   :  { %v1713_v52 = vadd.f32 %v1712_v8, %v1672_v14  ;;  %v1674_v31 = vadd.f32 %v1673_v23, %v5962_v12  ;;  %v1973_v12 = vrot.slane %v5975_v33, %v5978_v34  ;;  %v5294_v8 = vld [vmem:[#allocation8 + $0x68] ss:$16 sps:$4 sm:$0xff]   ;;  %v5314_v23 = vld [vmem:[#allocation8 + $0xc] ss:$16 sps:$4 sm:$0xff]  }
 0x17c   :  { %v1675_v19 = vpop.f32.mrf.mxu0  ;;  %v1716_v45 = vpop.f32.mrf.mxu1  ;;  %v5300_v14 = vld [vmem:[#allocation8 + $0x48] ss:$16 sps:$4 sm:$0xff]  }
 0x17d   :  { %2826 = vmatpush2.bf16.msra.mxu0 %v5270_v15  ;;  %2867 = vmatpush2.bf16.msra.mxu1 %v5366_v29  ;;  %v1715_v36 = vadd.f32 %v1714_v17, %v1674_v31  ;;  %v5308_v15 = vld [vmem:[#allocation8 + $0x2c] ss:$16 sps:$4 sm:$0xff]   ;;  %v5312_v17 = vld [vmem:[#allocation8 + $0x8] ss:$16 sps:$4 sm:$0xff]  }
 0x17e   :  { %v1676_v21 = vpop.f32.mrf.mxu0  ;;  %v1717_v22 = vpop.f32.mrf.mxu1  ;;  %2877 = vmatprep.subr.bf16.mxu0 %v5275_v18  ;;  %2918 = vmatprep.subr.bf16.mxu1 %v5371_v30  ;;  %v5320_v18 = vld [vmem:[#allocation8 + $0x1ec] ss:$16 sps:$4 sm:$0xff]   ;;  %v5324_v45 = vld [vmem:[#allocation8 + $0x1c8] ss:$16 sps:$4 sm:$0xff]   ;;  %v5994_v30 = vsub.s32 2, %v5908_v5 }
 0x17f   :  { %v5326_v19 = vld [vmem:[#allocation8 + $0x1cc] ss:$16 sps:$4 sm:$0xff]   ;;  %v5336_v22 = vld [vmem:[#allocation8 + $0x188] ss:$16 sps:$4 sm:$0xff]  }
 0x180   :  { %v1794_v9 = vpop.f32.mrf.mxu1  ;;  %v5338_v21 = vld [vmem:[#allocation8 + $0x18c] ss:$16 sps:$4 sm:$0xff]   ;;  %v5354_v28 = vld [vmem:[#allocation8 + $0x128] ss:$16 sps:$4 sm:$0xff]  }
 0x181   :  { %v5362_v31 = vld [vmem:[#allocation8 + $0x10c] ss:$16 sps:$4 sm:$0xff]  }
 0x182   :  { %v1796_v58 = vpop.f32.mrf.mxu1 }
 0x184   :  { %v1798_v61 = vpop.f32.mrf.mxu1 }
 0x185   :  { %v5348_v61 = vld [vmem:[#allocation8 + $0x148] ss:$16 sps:$4 sm:$0xff]  }
 0x186   :  { %v1799_v27 = vpop.f32.mrf.mxu1 }
 0x1b8   :  { %v1753_v35 = vpop.f32.mrf.mxu0 }
 0x1b9   :  { %v1754_v37 = vadd.f32 %v1753_v35, %v1713_v52  ;;  %v5318_v52 = vld [vmem:[#allocation8 + $0x1e8] ss:$16 sps:$4 sm:$0xff]  }
 0x1ba   :  { %v1755_v39 = vpop.f32.mrf.mxu0 }
 0x1bb   :  { %v1795_v40 = vadd.f32 %v1794_v9, %v1754_v37  ;;  %v1756_v41 = vadd.f32 %v1755_v39, %v1715_v36  ;;  %v5344_v9 = vld [vmem:[#allocation8 + $0x16c] ss:$16 sps:$4 sm:$0xff]  }
 0x1bc   :  { %v1757_v42 = vpop.f32.mrf.mxu0 }
 0x1bd   :  { %v1986_v43 = vadd.f32 %v1969_v38, %v1795_v40  ;;  %v1797_v44 = vadd.f32 %v1796_v58, %v1756_v41  ;;  %v5999_v38 = vsub.s32 3, %v5908_v5  ;;  %v5360_v41 = vld [vmem:[#allocation8 + $0x108] ss:$16 sps:$4 sm:$0xff]  }
 0x1be   :  { %v1758_v46 = vpop.f32.mrf.mxu0 }
 0x1bf   :  { %vm1990_vm1 = vcmp.ge.f32.partialorder %v1986_v43, 0.0  ;;  %v1994_v47 = vmul.f32 0.2, %v1986_v43  ;;  %v1987_v48 = vadd.f32 %v1973_v12, %v1797_v44 }
 0x1c0   :  { %v5984_v49 = vpop.f32.mrf.mxu1 }
 0x1c1   :  { %vm1991_vm2 = vcmp.ge.f32.partialorder %v1987_v48, 0.0  ;;  %v1995_v50 = vmul.f32 0.2, %v1987_v48  ;;  %v1998_v53 = vsel %vm1990_vm1, %v1986_v43, %v1994_v47  ;;  %v1836_v29 = vadd.f32 %v5984_v49, %v5959_v10 }
 0x1c2   :  { %v5986_v51 = vpop.f32.mrf.mxu1  ;;  %v5988_v60 = vpack.c.bf16 %v1998_v53, %v1998_v53  ;;  %v1977_v10 = vrot.slane %v5975_v33, %v5994_v30 }
 0x1c3   :  { %v1999_v54 = vsel %vm1991_vm2, %v1987_v48, %v1995_v50  ;;  %v1838_v36 = vadd.f32 %v5986_v51, %v5964_v13  ;;  %v1981_v13 = vrot.slane %v5975_v33, %v5999_v38  ;;  %v5374_v33 = vld [vmem:[#allocation8 + $0x2cc] ss:$16 sps:$4 sm:$0xff]  }
 0x1c4   :  { %v1839_v55 = vpop.f32.mrf.mxu1  ;;  %v2003_v56 = vpack.c.bf16 %v1999_v54, %v1999_v54 }
 0x1c6   :  { %v1840_v63 = vpop.f32.mrf.mxu1  ;;  %2827 = vmatprep.mubr.bf16.mxu0 %v2003_v56 }
 0x1c7   :  { %2828 = vmatmul.mubr.bf16.vlgmr.msra.gmra.mxu0 %v5988_v60 }
 0x1c8   :  { %2878 = vmatpush1.bf16.msra.mxu0 %v5273_v59  ;;  %2909 = vmatprep.mubr.bf16.mxu0 %v2003_v56 }
 0x1c9   :  { %2879 = vmatprep.subr.bf16.mxu0 %v5278_v62 }
 0x1cc   :  { %2880 = vmatpush1.bf16.msra.mxu0 %v5276_v1  ;;  %v5369_v1 = vld [vmem:[#allocation8 + $0x2e8] ss:$16 sps:$4 sm:$0xff]  }
 0x1cd   :  { %2881 = vmatprep.subr.bf16.mxu0 %v5284_v2 }
 0x1d0   :  { %2882 = vmatpush1.bf16.msra.mxu0 %v5282_v3  ;;  %v5417_v3 = vld [vmem:[#allocation10 + $0xe0] ss:$16 sps:$4 sm:$0xff]  }
 0x1d1   :  { %2883 = vmatprep.subr.bf16.mxu0 %v5290_v4  ;;  %v5419_v4 = vld [vmem:[#allocation10 + $0xe4] ss:$16 sps:$4 sm:$0xff]  }
 0x1d4   :  { %2884 = vmatpush1.bf16.msra.mxu0 %v5288_v6  ;;  %v5422_v6 = vld [vmem:[#allocation10 + $0xc4] ss:$16 sps:$4 sm:$0xff]  }
 0x1d5   :  { %2885 = vmatprep.subr.bf16.mxu0 %v5296_v7  ;;  %v5372_v7 = vld [vmem:[#allocation8 + $0x2c8] ss:$16 sps:$4 sm:$0xff]  }
 0x1d8   :  { %2886 = vmatpush1.bf16.msra.mxu0 %v5294_v8  ;;  %v5420_v8 = vld [vmem:[#allocation10 + $0xc0] ss:$16 sps:$4 sm:$0xff]  }
 0x1d9   :  { %2887 = vmatprep.subr.bf16.mxu0 %v5302_v11  ;;  %v5425_v11 = vld [vmem:[#allocation10 + $0xa4] ss:$16 sps:$4 sm:$0xff]  }
 0x1dc   :  { %2888 = vmatpush1.bf16.msra.mxu0 %v5300_v14  ;;  %v5375_v14 = vld [vmem:[#allocation8 + $0x2a8] ss:$16 sps:$4 sm:$0xff]  }
 0x1dd   :  { %2889 = vmatprep.subr.bf16.mxu0 %v5308_v15  ;;  %v5380_v15 = vld [vmem:[#allocation8 + $0x28c] ss:$16 sps:$4 sm:$0xff]  }
 0x1e0   :  { %2890 = vmatpush1.bf16.msra.mxu0 %v5306_v16  ;;  %v5423_v16 = vld [vmem:[#allocation10 + $0xa0] ss:$16 sps:$4 sm:$0xff]  }
 0x1e1   :  { %2891 = vmatprep.subr.bf16.mxu0 %v5314_v23  ;;  %v5428_v23 = vld [vmem:[#allocation10 + $0x84] ss:$16 sps:$4 sm:$0xff]  }
 0x1e4   :  { %2892 = vmatpush1.bf16.msra.mxu0 %v5312_v17  ;;  %v5378_v17 = vld [vmem:[#allocation8 + $0x288] ss:$16 sps:$4 sm:$0xff]  }
 0x1e5   :  { %2893 = vmatprep.subr.bf16.mxu0 %v5320_v18  ;;  %v5383_v18 = vld [vmem:[#allocation8 + $0x26c] ss:$16 sps:$4 sm:$0xff]  }
 0x1e8   :  { %2894 = vmatpush2.bf16.msra.mxu0 %v5318_v52  ;;  %v5426_v52 = vld [vmem:[#allocation10 + $0x80] ss:$16 sps:$4 sm:$0xff]  }
 0x1e9   :  { %2895 = vmatprep.subr.bf16.mxu0 %v5326_v19  ;;  %v5431_v19 = vld [vmem:[#allocation10 + $0x64] ss:$16 sps:$4 sm:$0xff]  }
 0x1ec   :  { %2896 = vmatpush2.bf16.msra.mxu0 %v5324_v45  ;;  %v5381_v45 = vld [vmem:[#allocation8 + $0x268] ss:$16 sps:$4 sm:$0xff]  }
 0x1ed   :  { %2897 = vmatprep.subr.bf16.mxu0 %v5332_v0  ;;  %v5386_v0 = vld [vmem:[#allocation8 + $0x24c] ss:$16 sps:$4 sm:$0xff]  }
 0x1f0   :  { %2898 = vmatpush2.bf16.msra.mxu0 %v5330_v20  ;;  %v5429_v20 = vld [vmem:[#allocation10 + $0x60] ss:$16 sps:$4 sm:$0xff]  }
 0x1f1   :  { %2899 = vmatprep.subr.bf16.mxu0 %v5338_v21  ;;  %v5434_v21 = vld [vmem:[#allocation10 + $0x44] ss:$16 sps:$4 sm:$0xff]  }
 0x1f4   :  { %2900 = vmatpush2.bf16.msra.mxu0 %v5336_v22  ;;  %v5384_v22 = vld [vmem:[#allocation8 + $0x248] ss:$16 sps:$4 sm:$0xff]  }
 0x1f5   :  { %2901 = vmatprep.subr.bf16.mxu0 %v5344_v9  ;;  %v5389_v9 = vld [vmem:[#allocation8 + $0x22c] ss:$16 sps:$4 sm:$0xff]  }
 0x1f8   :  { %2902 = vmatpush2.bf16.msra.mxu0 %v5342_v24  ;;  %v1876_v58 = vpop.f32.mrf.mxu0  ;;  %v5432_v24 = vld [vmem:[#allocation10 + $0x40] ss:$16 sps:$4 sm:$0xff]  }
 0x1f9   :  { %2903 = vmatprep.subr.bf16.mxu0 %v5350_v57  ;;  %v1877_v37 = vadd.f32 %v1876_v58, %v1836_v29  ;;  %v5437_v57 = vld [vmem:[#allocation10 + $0x24] ss:$16 sps:$4 sm:$0xff]   ;;  %v5387_v58 = vld [vmem:[#allocation8 + $0x228] ss:$16 sps:$4 sm:$0xff]   ;;  %v5438_v29 = vld [vmem:[#allocation10] ss:$16 sps:$4 sm:$0xff]  }
 0x1fa   :  { %v1878_v26 = vpop.f32.mrf.mxu0 }
 0x1fb   :  { %v1879_v12 = vadd.f32 %v1878_v26, %v1838_v36  ;;  %v5440_v26 = vld [vmem:[#allocation10 + $0x4] ss:$16 sps:$4 sm:$0xff]   ;;  %v5398_v36 = vld [vmem:[#allocation8 + $0x3cc] ss:$16 sps:$4 sm:$0xff]  }
 0x1fc   :  { %2904 = vmatpush2.bf16.msra.mxu0 %v5348_v61  ;;  %v1880_v27 = vpop.f32.mrf.mxu0  ;;  %v5392_v61 = vld [vmem:[#allocation8 + $0x20c] ss:$16 sps:$4 sm:$0xff]  }
 0x1fd   :  { %2905 = vmatprep.subr.bf16.mxu0 %v5356_v25  ;;  %v5435_v25 = vld [vmem:[#allocation10 + $0x20] ss:$16 sps:$4 sm:$0xff]   ;;  %v5390_v27 = vld [vmem:[#allocation8 + $0x208] ss:$16 sps:$4 sm:$0xff]  }
 0x1fe   :  { %v1881_v35 = vpop.f32.mrf.mxu0 }
 0x1ff   :  { %v5393_v35 = vld [vmem:[#allocation8 + $0x3e8] ss:$16 sps:$4 sm:$0xff]  }
 0x200   :  { %v1917_v39 = vpop.f32.mrf.mxu1  ;;  %2906 = vmatpush2.bf16.msra.mxu0 %v5354_v28  ;;  %v1958_v40 = vpop.f32.mrf.mxu0  ;;  %v5395_v28 = vld [vmem:[#allocation8 + $0x3ec] ss:$16 sps:$4 sm:$0xff]  }
 0x201   :  { %v1918_v42 = vadd.f32 %v1917_v39, %v1877_v37  ;;  %2907 = vmatprep.subr.bf16.mxu0 %v5362_v31  ;;  %v5443_v31 = vld [vmem:[#allocation10 + $0x1e4] ss:$16 sps:$4 sm:$0xff]   ;;  %v5441_v37 = vld [vmem:[#allocation10 + $0x1e0] ss:$16 sps:$4 sm:$0xff]  }
 0x202   :  { %v1919_v43 = vpop.f32.mrf.mxu1  ;;  %v1960_v44 = vpop.f32.mrf.mxu0  ;;  %v5446_v39 = vld [vmem:[#allocation10 + $0x1c4] ss:$16 sps:$4 sm:$0xff]  }
 0x203   :  { %v1959_v46 = vadd.f32 %v1958_v40, %v1918_v42  ;;  %v1920_v47 = vadd.f32 %v1919_v43, %v1879_v12  ;;  %v5396_v40 = vld [vmem:[#allocation8 + $0x3c8] ss:$16 sps:$4 sm:$0xff]   ;;  %v5444_v12 = vld [vmem:[#allocation10 + $0x1c0] ss:$16 sps:$4 sm:$0xff]   ;;  %v5449_v42 = vld [vmem:[#allocation10 + $0x1a4] ss:$16 sps:$4 sm:$0xff]  }
 0x204   :  { %v1921_v48 = vpop.f32.mrf.mxu1  ;;  %2908 = vmatpush2.bf16.msra.mxu0 %v5360_v41  ;;  %v1962_v5 = vpop.f32.mrf.mxu0  ;;  %v5401_v41 = vld [vmem:[#allocation8 + $0x3ac] ss:$16 sps:$4 sm:$0xff]  }
 0x205   :  { %v1988_v49 = vadd.f32 %v1977_v10, %v1959_v46  ;;  %v1961_v50 = vadd.f32 %v1960_v44, %v1920_v47  ;;  %3764 = vmatprep.subr.bf16.mxu0 %v5419_v4  ;;  %v5399_v10 = vld [vmem:[#allocation8 + $0x3a8] ss:$16 sps:$4 sm:$0xff]   ;;  %v5404_v43 = vld [vmem:[#allocation8 + $0x38c] ss:$16 sps:$4 sm:$0xff]   ;;  %v5447_v44 = vld [vmem:[#allocation10 + $0x1a0] ss:$16 sps:$4 sm:$0xff]  }
 0x206   :  { %v1922_v51 = vpop.f32.mrf.mxu1  ;;  %v1963_v53 = vpop.f32.mrf.mxu0  ;;  %v5452_v46 = vld [vmem:[#allocation10 + $0x184] ss:$16 sps:$4 sm:$0xff]   ;;  %v5402_v47 = vld [vmem:[#allocation8 + $0x388] ss:$16 sps:$4 sm:$0xff]   ;;  %v5450_v48 = vld [vmem:[#allocation10 + $0x180] ss:$16 sps:$4 sm:$0xff]  }
 0x207   :  { %vm1992_vm3 = vcmp.ge.f32.partialorder %v1988_v49, 0.0  ;;  %v1996_v54 = vmul.f32 0.2, %v1988_v49  ;;  %v1989_v55 = vadd.f32 %v1981_v13, %v1961_v50  ;;  %2910 = vmatmul.mubr.bf16.vlgmr.msra.gmra.mxu0 %v5988_v60  ;;  %v5377_v60 = vld [vmem:[#allocation8 + $0x2ac] ss:$16 sps:$4 sm:$0xff]  }
 0x208   :  { %3765 = vmatpush1.bf16.msra.mxu0 %v5417_v3  ;;  %v5407_v13 = vld [vmem:[#allocation8 + $0x36c] ss:$16 sps:$4 sm:$0xff]   ;;  %v5405_v5 = vld [vmem:[#allocation8 + $0x368] ss:$16 sps:$4 sm:$0xff]   ;;  %v5464_v3 = vld [vmem:[#allocation10 + $0x104] ss:$16 sps:$4 sm:$0xff]  }
 0x209   :  { %v1997_v56 = vmul.f32 0.2, %v1989_v55  ;;  %vm1993_vm4 = vcmp.ge.f32.partialorder %v1989_v55, 0.0  ;;  %v2000_v59 = vsel %vm1992_vm3, %v1988_v49, %v1996_v54  ;;  %3766 = vmatprep.subr.bf16.mxu0 %v5422_v6  ;;  %v5410_v49 = vld [vmem:[#allocation8 + $0x34c] ss:$16 sps:$4 sm:$0xff]  }
 0x20a   :  { %v6006_v2 = vpack.c.bf16 %v2000_v59, %v2000_v59  ;;  %v5408_v50 = vld [vmem:[#allocation8 + $0x348] ss:$16 sps:$4 sm:$0xff]   ;;  %v5413_v51 = vld [vmem:[#allocation8 + $0x32c] ss:$16 sps:$4 sm:$0xff]   ;;  %v5453_v59 = vld [vmem:[#allocation10 + $0x160] ss:$16 sps:$4 sm:$0xff]  }
 0x20b   :  { %v2001_v62 = vsel %vm1993_vm4, %v1989_v55, %v1997_v56  ;;  %v5411_v53 = vld [vmem:[#allocation8 + $0x328] ss:$16 sps:$4 sm:$0xff]   ;;  %v5416_v54 = vld [vmem:[#allocation8 + $0x30c] ss:$16 sps:$4 sm:$0xff]   ;;  %v5455_v56 = vld [vmem:[#allocation10 + $0x164] ss:$16 sps:$4 sm:$0xff]  }
 0x20c   :  { %v2005_v63 = vpack.c.bf16 %v2001_v62, %v2001_v62  ;;  %3767 = vmatpush1.bf16.msra.mxu0 %v5420_v8  ;;  %v5414_v55 = vld [vmem:[#allocation8 + $0x308] ss:$16 sps:$4 sm:$0xff]   ;;  %v5458_v62 = vld [vmem:[#allocation10 + $0x144] ss:$16 sps:$4 sm:$0xff]   ;;  %v5462_v4 = vld [vmem:[#allocation10 + $0x100] ss:$16 sps:$4 sm:$0xff]  }
 0x20d   :  { %3768 = vmatprep.subr.bf16.mxu0 %v5425_v11  ;;  %v5465_v6 = vld [vmem:[#allocation10 + $0x2e0] ss:$16 sps:$4 sm:$0xff]   ;;  %v5473_v11 = vld [vmem:[#allocation10 + $0x2c4] ss:$16 sps:$4 sm:$0xff]  }
 0x20e   :  { %2868 = vmatprep.mubr.bf16.mxu1 %v2005_v63  ;;  %v5471_v8 = vld [vmem:[#allocation10 + $0x2c0] ss:$16 sps:$4 sm:$0xff]  }
 0x20f   :  { %2869 = vmatmul.mubr.bf16.vlgmr.msra.gmra.mxu1 %v6006_v2 }
 0x210   :  { %2919 = vmatpush1.bf16.msra.mxu1 %v5369_v1  ;;  %2950 = vmatprep.mubr.bf16.mxu1 %v2005_v63  ;;  %v5456_v63 = vld [vmem:[#allocation10 + $0x140] ss:$16 sps:$4 sm:$0xff]   ;;  %v5461_v1 = vld [vmem:[#allocation10 + $0x124] ss:$16 sps:$4 sm:$0xff]  }
 0x211   :  { %2920 = vmatprep.subr.bf16.mxu1 %v5374_v33  ;;  %3769 = vmatpush1.bf16.msra.mxu0 %v5423_v16  ;;  %v5459_v33 = vld [vmem:[#allocation10 + $0x120] ss:$16 sps:$4 sm:$0xff]   ;;  %v5485_v16 = vld [vmem:[#allocation10 + $0x284] ss:$16 sps:$4 sm:$0xff]  }
 0x212   :  { %3770 = vmatprep.subr.bf16.mxu0 %v5428_v23  ;;  %v5489_v23 = vld [vmem:[#allocation10 + $0x260] ss:$16 sps:$4 sm:$0xff]  }
 0x214   :  { %2921 = vmatpush1.bf16.msra.mxu1 %v5372_v7  ;;  %v5467_v7 = vld [vmem:[#allocation10 + $0x2e4] ss:$16 sps:$4 sm:$0xff]  }
 0x215   :  { %2922 = vmatprep.subr.bf16.mxu1 %v5377_v60  ;;  %3771 = vmatpush1.bf16.msra.mxu0 %v5426_v52  ;;  %v5470_v60 = vld [vmem:[#allocation10 + $0xec] ss:$16 sps:$4 sm:$0xff]   ;;  %v5497_v52 = vld [vmem:[#allocation10 + $0x244] ss:$16 sps:$4 sm:$0xff]  }
 0x216   :  { %3772 = vmatprep.subr.bf16.mxu0 %v5431_v19  ;;  %v5501_v19 = vld [vmem:[#allocation10 + $0x220] ss:$16 sps:$4 sm:$0xff]  }
 0x218   :  { %2923 = vmatpush1.bf16.msra.mxu1 %v5375_v14  ;;  %v5479_v14 = vld [vmem:[#allocation10 + $0x2a4] ss:$16 sps:$4 sm:$0xff]  }
 0x219   :  { %2924 = vmatprep.subr.bf16.mxu1 %v5380_v15  ;;  %3773 = vmatpush1.bf16.msra.mxu0 %v5429_v20  ;;  %v5483_v15 = vld [vmem:[#allocation10 + $0x280] ss:$16 sps:$4 sm:$0xff]   ;;  %v5509_v20 = vld [vmem:[#allocation10 + $0x204] ss:$16 sps:$4 sm:$0xff]  }
 0x21a   :  { %3774 = vmatprep.subr.bf16.mxu0 %v5434_v21  ;;  %v5513_v21 = vld [vmem:[#allocation10 + $0x3e0] ss:$16 sps:$4 sm:$0xff]  }
 0x21c   :  { %2925 = vmatpush1.bf16.msra.mxu1 %v5378_v17  ;;  %v5491_v17 = vld [vmem:[#allocation10 + $0x264] ss:$16 sps:$4 sm:$0xff]  }
 0x21d   :  { %2926 = vmatprep.subr.bf16.mxu1 %v5383_v18  ;;  %3775 = vmatpush1.bf16.msra.mxu0 %v5432_v24  ;;  %v5495_v18 = vld [vmem:[#allocation10 + $0x240] ss:$16 sps:$4 sm:$0xff]   ;;  %v5521_v24 = vld [vmem:[#allocation10 + $0x3c4] ss:$16 sps:$4 sm:$0xff]  }
 0x21e   :  { %3776 = vmatprep.subr.bf16.mxu0 %v5437_v57  ;;  %v5525_v57 = vld [vmem:[#allocation10 + $0x3a0] ss:$16 sps:$4 sm:$0xff]  }
 0x220   :  { %2927 = vmatpush1.bf16.msra.mxu1 %v5381_v45  ;;  %v5503_v45 = vld [vmem:[#allocation10 + $0x224] ss:$16 sps:$4 sm:$0xff]  }
 0x221   :  { %2928 = vmatprep.subr.bf16.mxu1 %v5386_v0  ;;  %3777 = vmatpush1.bf16.msra.mxu0 %v5435_v25  ;;  %v5507_v0 = vld [vmem:[#allocation10 + $0x200] ss:$16 sps:$4 sm:$0xff]   ;;  %v5533_v25 = vld [vmem:[#allocation10 + $0x384] ss:$16 sps:$4 sm:$0xff]  }
 0x222   :  { %3778 = vmatprep.subr.bf16.mxu0 %v5440_v26 }
 0x224   :  { %2929 = vmatpush1.bf16.msra.mxu1 %v5384_v22  ;;  %v5515_v22 = vld [vmem:[#allocation10 + $0x3e4] ss:$16 sps:$4 sm:$0xff]  }
 0x225   :  { %2930 = vmatprep.subr.bf16.mxu1 %v5389_v9  ;;  %3779 = vmatpush1.bf16.msra.mxu0 %v5438_v29  ;;  %v5519_v9 = vld [vmem:[#allocation10 + $0x3c0] ss:$16 sps:$4 sm:$0xff]  }
 0x226   :  { %3780 = vmatprep.subr.bf16.mxu0 %v5443_v31 }
 0x228   :  { %2931 = vmatpush1.bf16.msra.mxu1 %v5387_v58  ;;  %v5527_v58 = vld [vmem:[#allocation10 + $0x3a4] ss:$16 sps:$4 sm:$0xff]  }
 0x229   :  { %2932 = vmatprep.subr.bf16.mxu1 %v5392_v61  ;;  %3781 = vmatpush2.bf16.msra.mxu0 %v5441_v37  ;;  %v5531_v61 = vld [vmem:[#allocation10 + $0x380] ss:$16 sps:$4 sm:$0xff]  }
 0x22a   :  { %3782 = vmatprep.subr.bf16.mxu0 %v5446_v39  ;;  %v5551_v39 = vld [vmem:[#allocation10 + $0x324] ss:$16 sps:$4 sm:$0xff]  }
 0x22c   :  { %2933 = vmatpush1.bf16.msra.mxu1 %v5390_v27  ;;  %v5537_v27 = vld [vmem:[#allocation10 + $0x360] ss:$16 sps:$4 sm:$0xff]  }
 0x22d   :  { %2934 = vmatprep.subr.bf16.mxu1 %v5395_v28  ;;  %3783 = vmatpush2.bf16.msra.mxu0 %v5444_v12  ;;  %v5539_v28 = vld [vmem:[#allocation10 + $0x364] ss:$16 sps:$4 sm:$0xff]   ;;  %v5555_v12 = vld [vmem:[#allocation10 + $0x300] ss:$16 sps:$4 sm:$0xff]  }
 0x22e   :  { %3784 = vmatprep.subr.bf16.mxu0 %v5449_v42  ;;  %v5563_v42 = vld [vmem:[#allocation10 + $0x2ec] ss:$16 sps:$4 sm:$0xff]  }
 0x230   :  { %2935 = vmatpush2.bf16.msra.mxu1 %v5393_v35  ;;  %v5543_v35 = vld [vmem:[#allocation10 + $0x340] ss:$16 sps:$4 sm:$0xff]  }
 0x231   :  { %2936 = vmatprep.subr.bf16.mxu1 %v5398_v36  ;;  %3785 = vmatpush2.bf16.msra.mxu0 %v5447_v44  ;;  %v5545_v36 = vld [vmem:[#allocation10 + $0x344] ss:$16 sps:$4 sm:$0xff]  }
 0x232   :  { %3786 = vmatprep.subr.bf16.mxu0 %v5452_v46 }
 0x234   :  { %2937 = vmatpush2.bf16.msra.mxu1 %v5396_v40  ;;  %v5549_v40 = vld [vmem:[#allocation10 + $0x320] ss:$16 sps:$4 sm:$0xff]  }
 0x235   :  { %2938 = vmatprep.subr.bf16.mxu1 %v5401_v41  ;;  %3787 = vmatpush2.bf16.msra.mxu0 %v5450_v48  ;;  %v5557_v41 = vld [vmem:[#allocation10 + $0x304] ss:$16 sps:$4 sm:$0xff]  }
 0x236   :  { %3788 = vmatprep.subr.bf16.mxu0 %v5455_v56 }
 0x238   :  { %2939 = vmatpush2.bf16.msra.mxu1 %v5399_v10  ;;  %v6010_v10 = vld [vmem:[#allocation13 + $0x4] sm:$0xf] }
 0x239   :  { %2940 = vmatprep.subr.bf16.mxu1 %v5404_v43  ;;  %3789 = vmatpush2.bf16.msra.mxu0 %v5453_v59  ;;  %v2138_v46 = vrot.slane %v6010_v10, %v5973_v32 }
 0x23a   :  { %3790 = vmatprep.subr.bf16.mxu0 %v5458_v62 }
 0x23c   :  { %2941 = vmatpush2.bf16.msra.mxu1 %v5402_v47 }
 0x23d   :  { %2942 = vmatprep.subr.bf16.mxu1 %v5407_v13  ;;  %3791 = vmatpush2.bf16.msra.mxu0 %v5456_v63  ;;  %v2142_v13 = vrot.slane %v6010_v10, %v5978_v34 }
 0x23e   :  { %3792 = vmatprep.subr.bf16.mxu0 %v5461_v1 }
 0x240   :  { %2943 = vmatpush2.bf16.msra.mxu1 %v5405_v5 }
 0x241   :  { %2944 = vmatprep.subr.bf16.mxu1 %v5410_v49  ;;  %3793 = vmatpush2.bf16.msra.mxu0 %v5459_v33 }
 0x242   :  { %3794 = vmatprep.subr.bf16.mxu0 %v5464_v3  ;;  %v5468_v3 = vld [vmem:[#allocation10 + $0xe8] ss:$16 sps:$4 sm:$0xff]  }
 0x244   :  { %2945 = vmatpush2.bf16.msra.mxu1 %v5408_v50 }
 0x245   :  { %2946 = vmatprep.subr.bf16.mxu1 %v5413_v51  ;;  %3795 = vmatpush2.bf16.msra.mxu0 %v5462_v4 }
 0x246   :  { %3846 = vmatprep.subr.bf16.mxu0 %v5470_v60  ;;  %v5482_v60 = vld [vmem:[#allocation10 + $0xac] ss:$16 sps:$4 sm:$0xff]  }
 0x248   :  { %2947 = vmatpush2.bf16.msra.mxu1 %v5411_v53 }
 0x249   :  { %2948 = vmatprep.subr.bf16.mxu1 %v5416_v54 }
 0x24c   :  { %2949 = vmatpush2.bf16.msra.mxu1 %v5414_v55 }
 0x24d   :  { %3805 = vmatprep.subr.bf16.mxu1 %v5467_v7  ;;  %v5474_v7 = vld [vmem:[#allocation10 + $0xc8] ss:$16 sps:$4 sm:$0xff]  }
 0x24f   :  { %2951 = vmatmul.mubr.bf16.vlgmr.msra.gmra.mxu1 %v6006_v2  ;;  %v5477_v2 = vld [vmem:[#allocation10 + $0x2a0] ss:$16 sps:$4 sm:$0xff]  }
 0x250   :  { %3806 = vmatpush1.bf16.msra.mxu1 %v5465_v6  ;;  %v5476_v6 = vld [vmem:[#allocation10 + $0xcc] ss:$16 sps:$4 sm:$0xff]  }
 0x251   :  { %3807 = vmatprep.subr.bf16.mxu1 %v5473_v11  ;;  %v5488_v11 = vld [vmem:[#allocation10 + $0x8c] ss:$16 sps:$4 sm:$0xff]  }
 0x254   :  { %3808 = vmatpush1.bf16.msra.mxu1 %v5471_v8  ;;  %v5480_v8 = vld [vmem:[#allocation10 + $0xa8] ss:$16 sps:$4 sm:$0xff]  }
 0x255   :  { %3809 = vmatprep.subr.bf16.mxu1 %v5479_v14  ;;  %v5494_v14 = vld [vmem:[#allocation10 + $0x6c] ss:$16 sps:$4 sm:$0xff]  }
 0x258   :  { %3810 = vmatpush1.bf16.msra.mxu1 %v5477_v2  ;;  %v5486_v2 = vld [vmem:[#allocation10 + $0x88] ss:$16 sps:$4 sm:$0xff]  }
 0x259   :  { %3811 = vmatprep.subr.bf16.mxu1 %v5485_v16  ;;  %v5500_v16 = vld [vmem:[#allocation10 + $0x4c] ss:$16 sps:$4 sm:$0xff]  }
 0x25c   :  { %3812 = vmatpush1.bf16.msra.mxu1 %v5483_v15  ;;  %v5492_v15 = vld [vmem:[#allocation10 + $0x68] ss:$16 sps:$4 sm:$0xff]  }
 0x25d   :  { %3813 = vmatprep.subr.bf16.mxu1 %v5491_v17  ;;  %v5506_v17 = vld [vmem:[#allocation10 + $0x2c] ss:$16 sps:$4 sm:$0xff]  }
 0x260   :  { %3814 = vmatpush1.bf16.msra.mxu1 %v5489_v23  ;;  %v5498_v23 = vld [vmem:[#allocation10 + $0x48] ss:$16 sps:$4 sm:$0xff]  }
 0x261   :  { %3815 = vmatprep.subr.bf16.mxu1 %v5497_v52  ;;  %v5512_v52 = vld [vmem:[#allocation10 + $0xc] ss:$16 sps:$4 sm:$0xff]  }
 0x264   :  { %3816 = vmatpush1.bf16.msra.mxu1 %v5495_v18  ;;  %v5504_v18 = vld [vmem:[#allocation10 + $0x28] ss:$16 sps:$4 sm:$0xff]  }
 0x265   :  { %3817 = vmatprep.subr.bf16.mxu1 %v5503_v45  ;;  %v5518_v45 = vld [vmem:[#allocation10 + $0x1ec] ss:$16 sps:$4 sm:$0xff]  }
 0x268   :  { %3818 = vmatpush1.bf16.msra.mxu1 %v5501_v19  ;;  %v5510_v19 = vld [vmem:[#allocation10 + $0x8] ss:$16 sps:$4 sm:$0xff]  }
 0x269   :  { %3819 = vmatprep.subr.bf16.mxu1 %v5509_v20  ;;  %v5524_v20 = vld [vmem:[#allocation10 + $0x1cc] ss:$16 sps:$4 sm:$0xff]  }
 0x26c   :  { %3820 = vmatpush1.bf16.msra.mxu1 %v5507_v0  ;;  %v5516_v0 = vld [vmem:[#allocation10 + $0x1e8] ss:$16 sps:$4 sm:$0xff]  }
 0x26d   :  { %3821 = vmatprep.subr.bf16.mxu1 %v5515_v22  ;;  %v5530_v22 = vld [vmem:[#allocation10 + $0x1ac] ss:$16 sps:$4 sm:$0xff]  }
 0x270   :  { %3822 = vmatpush2.bf16.msra.mxu1 %v5513_v21  ;;  %v5522_v21 = vld [vmem:[#allocation10 + $0x1c8] ss:$16 sps:$4 sm:$0xff]  }
 0x271   :  { %3823 = vmatprep.subr.bf16.mxu1 %v5521_v24  ;;  %v5536_v24 = vld [vmem:[#allocation10 + $0x18c] ss:$16 sps:$4 sm:$0xff]  }
 0x274   :  { %3824 = vmatpush2.bf16.msra.mxu1 %v5519_v9  ;;  %v5528_v9 = vld [vmem:[#allocation10 + $0x1a8] ss:$16 sps:$4 sm:$0xff]  }
 0x275   :  { %3825 = vmatprep.subr.bf16.mxu1 %v5527_v58  ;;  %v5542_v58 = vld [vmem:[#allocation10 + $0x16c] ss:$16 sps:$4 sm:$0xff]  }
 0x278   :  { %3826 = vmatpush2.bf16.msra.mxu1 %v5525_v57  ;;  %v5534_v57 = vld [vmem:[#allocation10 + $0x188] ss:$16 sps:$4 sm:$0xff]  }
 0x279   :  { %3827 = vmatprep.subr.bf16.mxu1 %v5533_v25  ;;  %v5548_v25 = vld [vmem:[#allocation10 + $0x14c] ss:$16 sps:$4 sm:$0xff]  }
 0x27c   :  { %3828 = vmatpush2.bf16.msra.mxu1 %v5531_v61  ;;  %v5540_v61 = vld [vmem:[#allocation10 + $0x168] ss:$16 sps:$4 sm:$0xff]  }
 0x27d   :  { %3829 = vmatprep.subr.bf16.mxu1 %v5539_v28  ;;  %v2150_v28 = vrot.slane %v6010_v10, %v5999_v38 }
 0x280   :  { %3830 = vmatpush2.bf16.msra.mxu1 %v5537_v27  ;;  %v5546_v27 = vld [vmem:[#allocation10 + $0x148] ss:$16 sps:$4 sm:$0xff]  }
 0x281   :  { %3831 = vmatprep.subr.bf16.mxu1 %v5545_v36  ;;  %v5552_v36 = vld [vmem:[#allocation10 + $0x128] ss:$16 sps:$4 sm:$0xff]  }
 0x284   :  { %3832 = vmatpush2.bf16.msra.mxu1 %v5543_v35 }
 0x285   :  { %3833 = vmatprep.subr.bf16.mxu1 %v5551_v39 }
 0x287   :  { %v2829_v26 = vpop.f32.mrf.mxu0 }
 0x288   :  { %3834 = vmatpush2.bf16.msra.mxu1 %v5549_v40  ;;  %v2830_v5 = vadd.f32 %v2829_v26, %v2138_v46  ;;  %v2146_v26 = vrot.slane %v6010_v10, %v5994_v30  ;;  %v5560_v40 = vld [vmem:[#allocation10 + $0x10c] ss:$16 sps:$4 sm:$0xff]  }
 0x289   :  { %v2831_v29 = vpop.f32.mrf.mxu0  ;;  %3835 = vmatprep.subr.bf16.mxu1 %v5557_v41 }
 0x28a   :  { %v2832_v50 = vadd.f32 %v2831_v29, %v2142_v13  ;;  %v5554_v29 = vld [vmem:[#allocation10 + $0x12c] ss:$16 sps:$4 sm:$0xff]  }
 0x28b   :  { %v2833_v31 = vpop.f32.mrf.mxu0 }
 0x28c   :  { %3836 = vmatpush2.bf16.msra.mxu1 %v5555_v12 }
 0x28d   :  { %v2834_v37 = vpop.f32.mrf.mxu0  ;;  %3887 = vmatprep.subr.bf16.mxu1 %v5563_v42 }
 0x2c7   :  { %v6012_v43 = vpop.f32.mrf.mxu0 }
 0x2c8   :  { %v2912_v31 = vadd.f32 %v6012_v43, %v2146_v26  ;;  %v5603_v26 = vld [vmem:[#allocation10 + $0x328] ss:$16 sps:$4 sm:$0xff]  }
 0x2c9   :  { %v6014_v44 = vpop.f32.mrf.mxu0 }
 0x2ca   :  { %v2914_v37 = vadd.f32 %v6014_v44, %v2150_v28  ;;  %v5606_v28 = vld [vmem:[#allocation10 + $0x308] ss:$16 sps:$4 sm:$0xff]  }
 0x2cb   :  { %v2915_v47 = vpop.f32.mrf.mxu0 }
 0x2cc   :  { %v5558_v47 = vld [vmem:[#allocation10 + $0x108] ss:$16 sps:$4 sm:$0xff]  }
 0x2cd   :  { %v2916_v48 = vpop.f32.mrf.mxu0 }
 0x2cf   :  { %v2870_v49 = vpop.f32.mrf.mxu1 }
 0x2d0   :  { %v2871_v51 = vadd.f32 %v2870_v49, %v2830_v5  ;;  %v5561_v49 = vld [vmem:[#allocation10 + $0x2e8] ss:$16 sps:$4 sm:$0xff]  }
 0x2d1   :  { %v2872_v53 = vpop.f32.mrf.mxu1 }
 0x2d2   :  { %vm2959_vm5 = vcmp.ge.f32.partialorder %v2871_v51, 0.0  ;;  %v2963_v54 = vmul.f32 0.2, %v2871_v51  ;;  %v2873_v55 = vadd.f32 %v2872_v53, %v2832_v50  ;;  %v5566_v50 = vld [vmem:[#allocation10 + $0x2cc] ss:$16 sps:$4 sm:$0xff]  }
 0x2d3   :  { %v2874_v56 = vpop.f32.mrf.mxu1  ;;  %v5569_v53 = vld [vmem:[#allocation10 + $0x2ac] ss:$16 sps:$4 sm:$0xff]  }
 0x2d4   :  { %vm2960_vm6 = vcmp.ge.f32.partialorder %v2873_v55, 0.0  ;;  %v2964_v59 = vmul.f32 0.2, %v2873_v55  ;;  %v2967_v62 = vsel %vm2959_vm5, %v2871_v51, %v2963_v54  ;;  %v5564_v51 = vld [vmem:[#allocation10 + $0x2c8] ss:$16 sps:$4 sm:$0xff]  }
 0x2d5   :  { %v2875_v63 = vpop.f32.mrf.mxu1  ;;  %v6020_v4 = vpack.c.bf16 %v2967_v62, %v2967_v62  ;;  %v5567_v54 = vld [vmem:[#allocation10 + $0x2a8] ss:$16 sps:$4 sm:$0xff]   ;;  %v5611_v62 = vld [vmem:[#allocation11 + $0x70] sm:$0xff]  }
 0x2d6   :  { %v2968_v1 = vsel %vm2960_vm6, %v2873_v55, %v2964_v59  ;;  %v5572_v55 = vld [vmem:[#allocation10 + $0x28c] ss:$16 sps:$4 sm:$0xff]   ;;  %v5570_v63 = vld [vmem:[#allocation10 + $0x288] ss:$16 sps:$4 sm:$0xff]  }
 0x2d7   :  { %v2972_v33 = vpack.c.bf16 %v2968_v1, %v2968_v1  ;;  %v5609_v56 = vld [vmem:[#allocation11 + $0x78] sm:$0xff]   ;;  %v5612_v1 = vld [vmem:[#allocation11 + $0x30] sm:$0xff]  }
 0x2d8   :  { %v5610_v59 = vld [vmem:[#allocation11 + $0x38] sm:$0xff]  }
 0x2d9   :  { %3796 = vmatprep.mubr.bf16.mxu0 %v2972_v33 }
 0x2da   :  { %3797 = vmatmul.mubr.bf16.vlgmr.msra.gmra.mxu0 %v6020_v4 }
 0x2db   :  { %3847 = vmatpush1.bf16.msra.mxu0 %v5468_v3  ;;  %3878 = vmatprep.mubr.bf16.mxu0 %v2972_v33  ;;  %v5575_v33 = vld [vmem:[#allocation10 + $0x26c] ss:$16 sps:$4 sm:$0xff]  }
 0x2dc   :  { %3848 = vmatprep.subr.bf16.mxu0 %v5476_v6  ;;  %v5613_v3 = vld [vmem:[#allocation11 + $0x68] sm:$0xff]  }
 0x2dd   :  { %v5614_v6 = vld [vmem:[#allocation11 + $0x28] sm:$0xff]  }
 0x2df   :  { %3849 = vmatpush1.bf16.msra.mxu0 %v5474_v7  ;;  %v5578_v7 = vld [vmem:[#allocation10 + $0x24c] ss:$16 sps:$4 sm:$0xff]  }
 0x2e0   :  { %3850 = vmatprep.subr.bf16.mxu0 %v5482_v60  ;;  %v5615_v60 = vld [vmem:[#allocation11 + $0x60] sm:$0xff]  }
 0x2e3   :  { %3851 = vmatpush1.bf16.msra.mxu0 %v5480_v8  ;;  %v5576_v8 = vld [vmem:[#allocation10 + $0x248] ss:$16 sps:$4 sm:$0xff]  }
 0x2e4   :  { %3852 = vmatprep.subr.bf16.mxu0 %v5488_v11  ;;  %v5616_v11 = vld [vmem:[#allocation11 + $0x20] sm:$0xff]  }
 0x2e7   :  { %3853 = vmatpush1.bf16.msra.mxu0 %v5486_v2  ;;  %v5581_v2 = vld [vmem:[#allocation10 + $0x22c] ss:$16 sps:$4 sm:$0xff]  }
 0x2e8   :  { %3854 = vmatprep.subr.bf16.mxu0 %v5494_v14  ;;  %v5617_v14 = vld [vmem:[#allocation11 + $0x58] sm:$0xff]  }
 0x2eb   :  { %3855 = vmatpush1.bf16.msra.mxu0 %v5492_v15  ;;  %v5579_v15 = vld [vmem:[#allocation10 + $0x228] ss:$16 sps:$4 sm:$0xff]  }
 0x2ec   :  { %3856 = vmatprep.subr.bf16.mxu0 %v5500_v16  ;;  %v5618_v16 = vld [vmem:[#allocation11 + $0x18] sm:$0xff]  }
 0x2ef   :  { %3857 = vmatpush1.bf16.msra.mxu0 %v5498_v23  ;;  %v5584_v23 = vld [vmem:[#allocation10 + $0x20c] ss:$16 sps:$4 sm:$0xff]  }
 0x2f0   :  { %3858 = vmatprep.subr.bf16.mxu0 %v5506_v17  ;;  %v5619_v17 = vld [vmem:[#allocation11 + $0x50] sm:$0xff]  }
 0x2f3   :  { %3859 = vmatpush1.bf16.msra.mxu0 %v5504_v18  ;;  %v5582_v18 = vld [vmem:[#allocation10 + $0x208] ss:$16 sps:$4 sm:$0xff]  }
 0x2f4   :  { %3860 = vmatprep.subr.bf16.mxu0 %v5512_v52  ;;  %v5587_v52 = vld [vmem:[#allocation10 + $0x3ec] ss:$16 sps:$4 sm:$0xff]  }
 0x2f7   :  { %3861 = vmatpush1.bf16.msra.mxu0 %v5510_v19  ;;  %v5585_v19 = vld [vmem:[#allocation10 + $0x3e8] ss:$16 sps:$4 sm:$0xff]  }
 0x2f8   :  { %3862 = vmatprep.subr.bf16.mxu0 %v5518_v45  ;;  %v5590_v45 = vld [vmem:[#allocation10 + $0x3cc] ss:$16 sps:$4 sm:$0xff]  }
 0x2fb   :  { %3863 = vmatpush2.bf16.msra.mxu0 %v5516_v0  ;;  %v5588_v0 = vld [vmem:[#allocation10 + $0x3c8] ss:$16 sps:$4 sm:$0xff]  }
 0x2fc   :  { %3864 = vmatprep.subr.bf16.mxu0 %v5524_v20  ;;  %v5593_v20 = vld [vmem:[#allocation10 + $0x3ac] ss:$16 sps:$4 sm:$0xff]  }
 0x2ff   :  { %3865 = vmatpush2.bf16.msra.mxu0 %v5522_v21  ;;  %v5591_v21 = vld [vmem:[#allocation10 + $0x3a8] ss:$16 sps:$4 sm:$0xff]  }
 0x300   :  { %3866 = vmatprep.subr.bf16.mxu0 %v5530_v22  ;;  %v5596_v22 = vld [vmem:[#allocation10 + $0x38c] ss:$16 sps:$4 sm:$0xff]  }
 0x303   :  { %3867 = vmatpush2.bf16.msra.mxu0 %v5528_v9  ;;  %v5594_v9 = vld [vmem:[#allocation10 + $0x388] ss:$16 sps:$4 sm:$0xff]  }
 0x304   :  { %3868 = vmatprep.subr.bf16.mxu0 %v5536_v24  ;;  %v5599_v24 = vld [vmem:[#allocation10 + $0x36c] ss:$16 sps:$4 sm:$0xff]  }
 0x307   :  { %3869 = vmatpush2.bf16.msra.mxu0 %v5534_v57  ;;  %v5597_v57 = vld [vmem:[#allocation10 + $0x368] ss:$16 sps:$4 sm:$0xff]  }
 0x308   :  { %3870 = vmatprep.subr.bf16.mxu0 %v5542_v58  ;;  %v5602_v58 = vld [vmem:[#allocation10 + $0x34c] ss:$16 sps:$4 sm:$0xff]  }
 0x30b   :  { %3871 = vmatpush2.bf16.msra.mxu0 %v5540_v61  ;;  %v5600_v61 = vld [vmem:[#allocation10 + $0x348] ss:$16 sps:$4 sm:$0xff]  }
 0x30c   :  { %3872 = vmatprep.subr.bf16.mxu0 %v5548_v25  ;;  %v5605_v25 = vld [vmem:[#allocation10 + $0x32c] ss:$16 sps:$4 sm:$0xff]  }
 0x30f   :  { %v2952_v35 = vpop.f32.mrf.mxu1  ;;  %3873 = vmatpush2.bf16.msra.mxu0 %v5546_v27  ;;  %v5608_v27 = vld [vmem:[#allocation10 + $0x30c] ss:$16 sps:$4 sm:$0xff]  }
 0x310   :  { %v2953_v39 = vadd.f32 %v2952_v35, %v2912_v31  ;;  %3874 = vmatprep.subr.bf16.mxu0 %v5554_v29  ;;  %v5620_v29 = vld [vmem:[#allocation11 + $0x10] sm:$0xff]   ;;  %v5621_v31 = vld [vmem:[#allocation11 + $0x48] sm:$0xff]  }
 0x311   :  { %v2954_v41 = vpop.f32.mrf.mxu1  ;;  %v5622_v35 = vld [vmem:[#allocation11 + $0x8] sm:$0xff]  }
 0x312   :  { %vm2961_vm7 = vcmp.ge.f32.partialorder %v2953_v39, 0.0  ;;  %v2965_v12 = vmul.f32 0.2, %v2953_v39  ;;  %v2955_v42 = vadd.f32 %v2954_v41, %v2914_v37  ;;  %v5624_v37 = vld [vmem:[#allocation11] sm:$0xff]   ;;  %v5627_v41 = vld [vmem:[#allocation11 + $0xf0] sm:$0xff]  }
 0x313   :  { %v2956_v46 = vpop.f32.mrf.mxu1  ;;  %3875 = vmatpush2.bf16.msra.mxu0 %v5552_v36  ;;  %v5623_v36 = vld [vmem:[#allocation11 + $0x40] sm:$0xff]  }
 0x314   :  { %vm2962_vm8 = vcmp.ge.f32.partialorder %v2955_v42, 0.0  ;;  %v2966_v10 = vmul.f32 0.2, %v2955_v42  ;;  %3876 = vmatprep.subr.bf16.mxu0 %v5560_v40  ;;  %v2969_v13 = vsel %vm2961_vm7, %v2953_v39, %v2965_v12  ;;  %v5625_v39 = vld [vmem:[#allocation11 + $0xf8] sm:$0xff]   ;;  %v5628_v12 = vld [vmem:[#allocation11 + $0xb0] sm:$0xff]   ;;  %v5630_v46 = vld [vmem:[#allocation11 + $0xa8] sm:$0xff]  }
 0x315   :  { %v2957_v43 = vpop.f32.mrf.mxu1  ;;  %v6029_v44 = vpack.c.bf16 %v2969_v13, %v2969_v13  ;;  %v5626_v40 = vld [vmem:[#allocation11 + $0xb8] sm:$0xff]  }
 0x316   :  { %v2970_v48 = vsel %vm2962_vm8, %v2955_v42, %v2966_v10  ;;  %v5629_v42 = vld [vmem:[#allocation11 + $0xe8] sm:$0xff]   ;;  %v5632_v10 = vld [vmem:[#allocation11 + $0xa0] sm:$0xff]   ;;  %v5633_v13 = vld [vmem:[#allocation11 + $0xd8] sm:$0xff]  }
 0x317   :  { %3877 = vmatpush2.bf16.msra.mxu0 %v5558_v47  ;;  %v2974_v5 = vpack.c.bf16 %v2970_v48, %v2970_v48  ;;  %v5631_v47 = vld [vmem:[#allocation11 + $0xe0] sm:$0xff]   ;;  %v5634_v43 = vld [vmem:[#allocation11 + $0x98] sm:$0xff]   ;;  %v5635_v48 = vld [vmem:[#allocation11 + $0xd0] sm:$0xff]  }
 0x318   :  { %4824 = vmatprep.subr.bf16.mxu0 %v5609_v56  ;;  %v5640_v56 = vld [vmem:[#allocation11 + $0x80] sm:$0xff]  }
 0x319   :  { %3837 = vmatprep.mubr.bf16.mxu1 %v2974_v5 }
 0x31a   :  { %3838 = vmatmul.mubr.bf16.vlgmr.msra.gmra.mxu1 %v6029_v44  ;;  %3879 = vmatmul.mubr.bf16.vlgmr.msra.gmra.mxu0 %v6020_v4  ;;  %v5573_v4 = vld [vmem:[#allocation10 + $0x268] ss:$16 sps:$4 sm:$0xff]  }
 0x31b   :  { %3888 = vmatpush1.bf16.msra.mxu1 %v5561_v49  ;;  %3919 = vmatprep.mubr.bf16.mxu1 %v2974_v5  ;;  %v5636_v5 = vld [vmem:[#allocation11 + $0x90] sm:$0xff]  }
 0x31c   :  { %3889 = vmatprep.subr.bf16.mxu1 %v5566_v50  ;;  %4825 = vmatpush3.bf16.msra.mxu0 %v5610_v59  ;;  %v124_v59 = vld [vmem:[#allocation13 + $0x8] sm:$0xf] }
 0x31d   :  { %4826 = vmatprep.subr.bf16.mxu0 %v5611_v62  ;;  %v3107_v62 = vrot.slane %v124_v59, %v5973_v32 }
 0x31f   :  { %3890 = vmatpush1.bf16.msra.mxu1 %v5564_v51  ;;  %v5638_v51 = vld [vmem:[#allocation11 + $0x88] sm:$0xff]  }
 0x320   :  { %3891 = vmatprep.subr.bf16.mxu1 %v5569_v53  ;;  %4827 = vmatpush3.bf16.msra.mxu0 %v5612_v1 }
 0x321   :  { %4828 = vmatprep.subr.bf16.mxu0 %v5613_v3 }
 0x323   :  { %3892 = vmatpush1.bf16.msra.mxu1 %v5567_v54  ;;  %v5639_v54 = vld [vmem:[#allocation11 + $0xc0] sm:$0xff]  }
 0x324   :  { %3893 = vmatprep.subr.bf16.mxu1 %v5572_v55  ;;  %4829 = vmatpush3.bf16.msra.mxu0 %v5614_v6 }
 0x325   :  { %4830 = vmatprep.subr.bf16.mxu0 %v5615_v60 }
 0x327   :  { %3894 = vmatpush1.bf16.msra.mxu1 %v5570_v63  ;;  %v3111_v63 = vrot.slane %v124_v59, %v5978_v34 }
 0x328   :  { %3895 = vmatprep.subr.bf16.mxu1 %v5575_v33  ;;  %4831 = vmatpush3.bf16.msra.mxu0 %v5616_v11 }
 0x329   :  { %4832 = vmatprep.subr.bf16.mxu0 %v5617_v14 }
 0x32b   :  { %3896 = vmatpush1.bf16.msra.mxu1 %v5573_v4 }
 0x32c   :  { %3897 = vmatprep.subr.bf16.mxu1 %v5578_v7  ;;  %4833 = vmatpush3.bf16.msra.mxu0 %v5618_v16 }
 0x32d   :  { %4834 = vmatprep.subr.bf16.mxu0 %v5619_v17 }
 0x32f   :  { %3898 = vmatpush1.bf16.msra.mxu1 %v5576_v8 }
 0x330   :  { %3899 = vmatprep.subr.bf16.mxu1 %v5581_v2  ;;  %4835 = vmatpush3.bf16.msra.mxu0 %v5620_v29 }
 0x331   :  { %4836 = vmatprep.subr.bf16.mxu0 %v5621_v31 }
 0x333   :  { %3900 = vmatpush1.bf16.msra.mxu1 %v5579_v15 }
 0x334   :  { %3901 = vmatprep.subr.bf16.mxu1 %v5584_v23  ;;  %4837 = vmatpush3.bf16.msra.mxu0 %v5622_v35 }
 0x335   :  { %4838 = vmatprep.subr.bf16.mxu0 %v5623_v36  ;;  %v4791_v36 = vld [vmem:[#allocation13 + $0xc] ss:$0 sm:$0xff] }
 0x337   :  { %3902 = vmatpush1.bf16.msra.mxu1 %v5582_v18 }
 0x338   :  { %3903 = vmatprep.subr.bf16.mxu1 %v5587_v52  ;;  %4839 = vmatpush3.bf16.msra.mxu0 %v5624_v37  ;;  %v3115_v52 = vrot.slane %v124_v59, %v5994_v30 }
 0x33b   :  { %3904 = vmatpush2.bf16.msra.mxu1 %v5585_v19  ;;  %v3119_v19 = vrot.slane %v124_v59, %v5999_v38 }
 0x33c   :  { %3905 = vmatprep.subr.bf16.mxu1 %v5590_v45 }
 0x33f   :  { %3906 = vmatpush2.bf16.msra.mxu1 %v5588_v0 }
 0x340   :  { %3907 = vmatprep.subr.bf16.mxu1 %v5593_v20 }
 0x343   :  { %3908 = vmatpush2.bf16.msra.mxu1 %v5591_v21 }
 0x344   :  { %3909 = vmatprep.subr.bf16.mxu1 %v5596_v22 }
 0x347   :  { %3910 = vmatpush2.bf16.msra.mxu1 %v5594_v9 }
 0x348   :  { %3911 = vmatprep.subr.bf16.mxu1 %v5599_v24 }
 0x34b   :  { %3912 = vmatpush2.bf16.msra.mxu1 %v5597_v57 }
 0x34c   :  { %3913 = vmatprep.subr.bf16.mxu1 %v5602_v58 }
 0x34f   :  { %3914 = vmatpush2.bf16.msra.mxu1 %v5600_v61 }
 0x350   :  { %3915 = vmatprep.subr.bf16.mxu1 %v5605_v25 }
 0x353   :  { %3916 = vmatpush2.bf16.msra.mxu1 %v5603_v26 }
 0x354   :  { %3917 = vmatprep.subr.bf16.mxu1 %v5608_v27 }
 0x357   :  { %3918 = vmatpush2.bf16.msra.mxu1 %v5606_v28 }
 0x358   :  { %4846 = vmatprep.subr.bf16.mxu1 %v5625_v39 }
 0x35a   :  { %3920 = vmatmul.mubr.bf16.vlgmr.msra.gmra.mxu1 %v6029_v44  ;;  %v5637_v44 = vld [vmem:[#allocation11 + $0xc8] sm:$0xff]  }
 0x35b   :  { %4847 = vmatpush3.bf16.msra.mxu1 %v5626_v40 }
 0x35c   :  { %4848 = vmatprep.subr.bf16.mxu1 %v5627_v41 }
 0x35f   :  { %4849 = vmatpush3.bf16.msra.mxu1 %v5628_v12 }
 0x360   :  { %4850 = vmatprep.subr.bf16.mxu1 %v5629_v42 }
 0x363   :  { %4851 = vmatpush3.bf16.msra.mxu1 %v5630_v46 }
 0x364   :  { %4852 = vmatprep.subr.bf16.mxu1 %v5631_v47 }
 0x367   :  { %4853 = vmatpush3.bf16.msra.mxu1 %v5632_v10 }
 0x368   :  { %4854 = vmatprep.subr.bf16.mxu1 %v5633_v13 }
 0x36b   :  { %4855 = vmatpush3.bf16.msra.mxu1 %v5634_v43 }
 0x36c   :  { %4856 = vmatprep.subr.bf16.mxu1 %v5635_v48 }
 0x36f   :  { %4857 = vmatpush3.bf16.msra.mxu1 %v5636_v5 }
 0x370   :  { %4858 = vmatprep.subr.bf16.mxu1 %v5637_v44 }
 0x373   :  { %4859 = vmatpush3.bf16.msra.mxu1 %v5638_v51 }
 0x374   :  { %4860 = vmatprep.subr.bf16.mxu1 %v5639_v54 }
 0x377   :  { %4861 = vmatpush3.bf16.msra.mxu1 %v5640_v56 }
 0x39a   :  { %v3798_v49 = vpop.f32.mrf.mxu0 }
 0x39b   :  { %v3799_v1 = vadd.f32 %v3798_v49, %v3107_v62 }
 0x39c   :  { %v3800_v50 = vpop.f32.mrf.mxu0 }
 0x39d   :  { %v3801_v4 = vadd.f32 %v3800_v50, %v3111_v63 }
 0x39e   :  { %v3802_v53 = vpop.f32.mrf.mxu0 }
 0x3a0   :  { %v3803_v55 = vpop.f32.mrf.mxu0 }
 0x3da   :  { %v3839_v33 = vpop.f32.mrf.mxu1  ;;  %v3880_v3 = vpop.f32.mrf.mxu0 }
 0x3db   :  { %v3840_v6 = vadd.f32 %v3839_v33, %v3799_v1  ;;  %v3881_v45 = vadd.f32 %v3880_v3, %v3115_v52 }
 0x3dc   :  { %v3841_v7 = vpop.f32.mrf.mxu1  ;;  %v3882_v60 = vpop.f32.mrf.mxu0 }
 0x3dd   :  { %vm3928_vm9 = vcmp.ge.f32.partialorder %v3840_v6, 0.0  ;;  %v3932_v8 = vmul.f32 0.2, %v3840_v6  ;;  %v3842_v11 = vadd.f32 %v3841_v7, %v3801_v4  ;;  %v3883_v20 = vadd.f32 %v3882_v60, %v3119_v19 }
 0x3de   :  { %v3843_v2 = vpop.f32.mrf.mxu1  ;;  %v3884_v14 = vpop.f32.mrf.mxu0 }
 0x3df   :  { %vm3929_vm10 = vcmp.ge.f32.partialorder %v3842_v11, 0.0  ;;  %v3933_v15 = vmul.f32 0.2, %v3842_v11  ;;  %v3936_v16 = vsel %vm3928_vm9, %v3840_v6, %v3932_v8 }
 0x3e0   :  { %v3844_v23 = vpop.f32.mrf.mxu1  ;;  %v3885_v17 = vpop.f32.mrf.mxu0  ;;  %v3940_v34 = vpack.c.bf16 %v3936_v16, %v3936_v16 }
 0x3e1   :  { %v3937_v32 = vsel %vm3929_vm10, %v3842_v11, %v3933_v15 }
 0x3e2   :  { %v3941_v18 = vpack.c.bf16 %v3937_v32, %v3937_v32 }
 0x3e4   :  { %4238 = vmatprep.mubr.bf16.mxu0 %v3941_v18 }
 0x3e5   :  { %4239 = vmatmul.mubr.bf16.vlgmr.msra.gmra.mxu0 %v3940_v34 }
 0x41a   :  { %v3921_v0 = vpop.f32.mrf.mxu1 }
 0x41b   :  { %v3922_v21 = vadd.f32 %v3921_v0, %v3881_v45 }
 0x41c   :  { %v3923_v22 = vpop.f32.mrf.mxu1 }
 0x41d   :  { %vm3930_vm11 = vcmp.ge.f32.partialorder %v3922_v21, 0.0  ;;  %v3934_v9 = vmul.f32 0.2, %v3922_v21  ;;  %v3924_v24 = vadd.f32 %v3923_v22, %v3883_v20 }
 0x41e   :  { %v3925_v57 = vpop.f32.mrf.mxu1 }
 0x41f   :  { %vm3931_vm12 = vcmp.ge.f32.partialorder %v3924_v24, 0.0  ;;  %v3935_v58 = vmul.f32 0.2, %v3924_v24  ;;  %v3938_v61 = vsel %vm3930_vm11, %v3922_v21, %v3934_v9 }
 0x420   :  { %v3926_v25 = vpop.f32.mrf.mxu1  ;;  %v3942_v28 = vpack.c.bf16 %v3938_v61, %v3938_v61 }
 0x421   :  { %v3939_v26 = vsel %vm3931_vm12, %v3924_v24, %v3935_v58 }
 0x422   :  { %v3943_v27 = vpack.c.bf16 %v3939_v26, %v3939_v26 }
 0x424   :  { %4278 = vmatprep.mubr.bf16.mxu1 %v3943_v27 }
 0x425   :  { %4279 = vmatmul.mubr.bf16.vlgmr.msra.gmra.mxu1 %v3942_v28 }
 0x4a5   :  { %v4840_v30 = vpop.f32.mrf.mxu0 }
 0x4a7   :  { %v4841_v38 = vpop.f32.mrf.mxu0 }
 0x4a8   :  { %v4842_v35 = vadd.f32 %v4841_v38, %v4840_v30 }
 0x4a9   :  { %v4843_v29 = vpop.f32.mrf.mxu0 }
 0x4aa   :  { %v4241_v40 = vadd.f32 %v4842_v35, %v4791_v36 }
 0x4ab   :  { %v4844_v31 = vpop.f32.mrf.mxu0 }
 0x4e5   :  { %v4862_v37 = vpop.f32.mrf.mxu1 }
 0x4e7   :  { %v4863_v39 = vpop.f32.mrf.mxu1 }
 0x4e8   :  { %v4864_v41 = vadd.f32 %v4863_v39, %v4862_v37 }
 0x4e9   :  { %v4865_v12 = vpop.f32.mrf.mxu1 }
 0x4ea   :  { %v4281_v42 = vadd.f32 %v4864_v41, %v4241_v40 }
 0x4eb   :  { %v4866_v46 = vpop.f32.mrf.mxu1 }
 0x4ec   :  { %4286 = vst [vmem:[#allocation14] sm:$0x3] %v4281_v42 }
 0x4ed   :  { %5792 = shalt.err (!%p5789_p11)
}
 0x4ee   :  { %4296 = dma.vmem_to_hbm [thread:$0]  %s4294_s30, 32, %s6049_s8, [#allocation4]  }
 0x4ef   :  { %5809 = dma.done.wait [#allocation4], 32  }
 0x4f0   :  { %5810 = vsyncadd [#allocation4], 4294967264 }
 0x4f1   :  { %4300 = vsyncpa [#allocation3], 1 }
 0x4f2   :  { %4301 = vsyncpa [#allocation6], 1 }
 0x4f3   :  { %4302 = vsyncpa [#allocation9], 1 }
 0x4f4   :  { %4303 = vsyncpa [#allocation12], 1 }
 0x4f5   :  { %4304 = vsyncpa [#allocation4], 1 }

</bundles_post_ra>
